<compile_context>
chip_gen: v7x
topology: tpu7x:2x2x1
jax: 0.10.0
libtpu: 0.0.40
codegen_flags: <defaults>
</compile_context>

<pallas_src>
import jax
import jax.numpy as jnp
from jax import lax
from jax.experimental import pallas as pl
from jax.experimental.pallas import tpu as pltpu

# ---- small, forward-consistent sizes ----
B = 2          # batch
T = 8          # max sequence length (== max(X_len))
E = 16         # embedding_dim
H = 32         # hidden_size (per direction)
C = 5          # class_num
VOCAB = 40     # num_embeddings
GG = 8 * H     # fused gate width: 4 gates x 2 directions x H = 256
TB = T * B
LANES = 128    # lane-dense classifier output width (first C columns are real)

_GATE_ORDER = (0, 1, 3, 2)   # PyTorch (i, f, g, o) -> fused (i, f, o, g)


# ------------------------- Pallas kernel -------------------------
def bilstm_classifier_kernel(
    ids_ref,   # (2*T*B, 1) i32  rows [0:TB] fwd time-major, [TB:2TB] time-reversed
    len_ref,   # (B, 1)     i32  sequence lengths
    ew_ref,    # (V, 8H)    bf16 fused emb @ W_ih, gate order (i,f,o,g), dir-interleaved
    bih_ref,   # (1, 8H)    f32  fused biases (b_ih + b_hh per direction)
    whh_ref,   # (2H, 8H)   bf16 block-diagonal fused recurrent weights
    wc_ref,    # (2H, 128)  bf16 classifier weights, lane-padded
    bc_ref,    # (1, 128)   f32  classifier bias, lane-padded
    out_ref,   # (T*B, 128) f32  time-major lane-dense emissions
    hc_ref,    # (T*B, 2H)  f32  scratch: [h_fwd(t) | h_bwd(t)] per output time t
):
    ids = ids_ref[...]                     # (2TB, 1)
    lens = len_ref[...]                    # (B, 1)
    bih = bih_ref[...]
    whh = whh_ref[...]

    # Static lane masks: forward lanes are the first H of every 2H block.
    lane_g = lax.broadcasted_iota(jnp.int32, (1, GG), 1)
    fwd_lane_g = (lane_g % (2 * H)) < H                                   # (1, 8H)
    lane_s = lax.broadcasted_iota(jnp.int32, (1, 2 * H), 1)
    fwd_lane_s = lane_s < H                                               # (1, 2H)

    # ---- embedding gather + input projection fused: ONE one-hot MXU pass for
    #      both time orders, then a single hoisted fwd/bwd lane select.
    viota = lax.broadcasted_iota(jnp.int32, (2 * TB, VOCAB), 1)
    onehot = (viota == ids).astype(jnp.bfloat16)                          # (2TB, V)
    xg_all = jnp.dot(onehot, ew_ref[...],
                     preferred_element_type=jnp.float32) + bih            # (2TB, 8H)
    xg_sel = jnp.where(fwd_lane_g, xg_all[:TB, :], xg_all[TB:, :])        # (TB, 8H)

    # LSTM state for both directions, kept in vregs across the unrolled loop.
    h = jnp.zeros((B, 2 * H), jnp.float32)     # [h_fwd | h_bwd]
    c = jnp.zeros((B, 2 * H), jnp.float32)

    # ---- fully unrolled fused bidirectional recurrence (T=8, static indices) ----
    for s in range(T):
        tb = T - 1 - s   # backward direction processes time tb at loop step s
        # dot first, then add (lets v7x use MRB in-place accumulation)
        g = jnp.dot(h.astype(jnp.bfloat16), whh,
                    preferred_element_type=jnp.float32)                   # (B, 8H)
        g = g + xg_sel[s * B:(s + 1) * B, :]

        sig = jax.nn.sigmoid(g[:, 0:6 * H])    # contiguous i | f | o gates
        gi = sig[:, 0:2 * H]
        gf = sig[:, 2 * H:4 * H]
        go = sig[:, 4 * H:6 * H]
        gc = jnp.tanh(g[:, 6 * H:8 * H])
        c_new = gf * c + gi * gc
        h_new = go * jnp.tanh(c_new)

        # validity: fwd lanes use time s, bwd lanes use time tb
        t_lane = jnp.where(fwd_lane_s, jnp.int32(s), jnp.int32(tb))       # (1, 2H)
        valid = lens > t_lane                                             # (B, 2H)
        h = jnp.where(valid, h_new, h)      # freeze state past sequence length
        c = jnp.where(valid, c_new, c)
        hm = jnp.where(valid, h_new, 0.0)   # zero padded outputs (pad_packed)

        # Park masked hidden states in scratch (off the h->h critical chain);
        # fwd half belongs to output time s, bwd half to output time tb.
        hc_ref[s * B:(s + 1) * B, 0:H] = hm[:, 0:H]
        hc_ref[tb * B:(tb + 1) * B, H:2 * H] = hm[:, H:2 * H]

    # ---- batched classifier epilogue: ONE matmul + one contiguous store ----
    hcat = hc_ref[...]                                                    # (TB, 2H)
    logits = jnp.dot(hcat.astype(jnp.bfloat16), wc_ref[...],
                     preferred_element_type=jnp.float32) + bc_ref[...]    # (TB, 128)
    out_ref[...] = logits


# ------------------------- parameter fusion (one-time prep) -------------------------
def _reorder(w):
    """(R, 4H) PyTorch gate order (i,f,g,o) -> (R, 4, H) in fused order (i,f,o,g)."""
    r = w.shape[0]
    return w.reshape(r, 4, H)[:, list(_GATE_ORDER), :]


def _interleave(a4, b4):
    """(R,4,H) fwd, (R,4,H) bwd -> (R, 8H): per gate block [fwd H | bwd H]."""
    r = a4.shape[0]
    return jnp.stack([a4, b4], axis=2).reshape(r, GG)


def prepare_fused_params(p):
    # Embedding table folded into the input projection: (V, 8H).
    ew_f = p["emb"] @ p["wih_f"]                                 # (V, 4H)
    ew_b = p["emb"] @ p["wih_b"]
    ew = _interleave(_reorder(ew_f), _reorder(ew_b)).astype(jnp.bfloat16)

    bih = _interleave(_reorder(p["b_f"]), _reorder(p["b_b"]))    # (1, 8H) f32

    z = jnp.zeros((H, 4, H), jnp.float32)
    top = _interleave(_reorder(p["whh_f"]), z)                   # rows = h_fwd
    bot = _interleave(z, _reorder(p["whh_b"]))                   # rows = h_bwd
    whh = jnp.concatenate([top, bot], axis=0).astype(jnp.bfloat16)   # (2H, 8H)

    wc = jnp.zeros((2 * H, LANES), jnp.float32).at[:, :C].set(p["wcls"])
    wc = wc.astype(jnp.bfloat16)
    bc = jnp.zeros((1, LANES), jnp.float32).at[:, :C].set(p["bcls"])
    return dict(ew=ew, bih=bih, whh=whh, wc=wc, bc=bc)


# ------------------------- wrapper -------------------------
def bilstm_forward(X, X_len, fused):
    ids_tm = jnp.transpose(X.astype(jnp.int32))                  # (T, B) time-major
    ids_all = jnp.concatenate([ids_tm, ids_tm[::-1]], axis=0).reshape(2 * TB, 1)
    lens = X_len.astype(jnp.int32).reshape(B, 1)

    out = pl.pallas_call(
        bilstm_classifier_kernel,
        out_shape=jax.ShapeDtypeStruct((TB, LANES), jnp.float32),
        in_specs=[pl.BlockSpec(memory_space=pltpu.MemorySpace.VMEM)] * 7,
        out_specs=pl.BlockSpec(memory_space=pltpu.MemorySpace.VMEM),
        scratch_shapes=[pltpu.VMEM((TB, 2 * H), jnp.float32)],
    )(ids_all, lens, fused["ew"], fused["bih"], fused["whh"],
      fused["wc"], fused["bc"])

    out = out.reshape(T, B, LANES)
    return jnp.transpose(out, (1, 0, 2))[:, :, :C]               # (B, T, C)


# ------------------------- pure-JAX reference -------------------------
def reference_forward(X, X_len, params):
    em = params["emb"][X]                                        # (B, T, E)
    lens = X_len.astype(jnp.int32)

    def run_dir(wih, whh, b, reverse):
        xg = jnp.einsum("bte,eg->btg", em, wih) + b              # (B, T, 4H)
        xg_t = jnp.transpose(xg, (1, 0, 2))                      # (T, B, 4H)
        ts = jnp.arange(T, dtype=jnp.int32)
        valid = (ts[:, None, None] < lens[None, :, None]).astype(jnp.float32)
        if reverse:
            xg_t = xg_t[::-1]
            valid = valid[::-1]

        def step(carry, inputs):
            h, c = carry
            xg_s, v = inputs
            g = xg_s + h @ whh
            i = jax.nn.sigmoid(g[:, 0:H])
            f = jax.nn.sigmoid(g[:, H:2 * H])
            gg = jnp.tanh(g[:, 2 * H:3 * H])
            o = jax.nn.sigmoid(g[:, 3 * H:4 * H])
            c_new = f * c + i * gg
            h_new = o * jnp.tanh(c_new)
            h2 = v * h_new + (1.0 - v) * h
            c2 = v * c_new + (1.0 - v) * c
            return (h2, c2), v * h_new

        init = (jnp.zeros((B, H), jnp.float32), jnp.zeros((B, H), jnp.float32))
        _, outs = lax.scan(step, init, (xg_t, valid))
        if reverse:
            outs = outs[::-1]
        return outs                                              # (T, B, H)

    of = run_dir(params["wih_f"], params["whh_f"], params["b_f"], False)
    ob = run_dir(params["wih_b"], params["whh_b"], params["b_b"], True)
    out = jnp.concatenate([of, ob], axis=-1)                     # (T, B, 2H)
    logits = out @ params["wcls"] + params["bcls"]               # (T, B, C)
    return jnp.transpose(logits, (1, 0, 2))                      # (B, T, C)


# ------------------------- deterministic params -------------------------
def make_params(key):
    ks = jax.random.split(key, 12)
    s_l = 1.0 / jnp.sqrt(jnp.float32(H))        # PyTorch LSTM init scale
    s_c = 1.0 / jnp.sqrt(jnp.float32(2 * H))    # PyTorch Linear init scale

    def u(k, shape, s):
        return jax.random.uniform(k, shape, jnp.float32, minval=-s, maxval=s)

    emb = jax.random.normal(ks[0], (VOCAB, E), jnp.float32)      # nn.Embedding: N(0,1)

    # PyTorch stores W_ih (4H, E), W_hh (4H, H); we keep transposes, biases combined.
    wih_f = u(ks[1], (4 * H, E), s_l).T
    whh_f = u(ks[2], (4 * H, H), s_l).T
    b_f = (u(ks[3], (4 * H,), s_l) + u(ks[4], (4 * H,), s_l)).reshape(1, 4 * H)
    wih_b = u(ks[5], (4 * H, E), s_l).T
    whh_b = u(ks[6], (4 * H, H), s_l).T
    b_b = (u(ks[7], (4 * H,), s_l) + u(ks[8], (4 * H,), s_l)).reshape(1, 4 * H)

    wcls = u(ks[9], (C, 2 * H), s_c).T
    bcls = u(ks[10], (C,), s_c).reshape(1, C)

    return dict(emb=emb, wih_f=wih_f, whh_f=whh_f, b_f=b_f,
                wih_b=wih_b, whh_b=whh_b, b_b=b_b, wcls=wcls, bcls=bcls)


if __name__ == "__main__":
    key = jax.random.PRNGKey(0)
    pkey, xkey = jax.random.split(key)
    params = make_params(pkey)
    fused = prepare_fused_params(params)        # one-time weight fusion / lane padding

    # Token ids [B, T]; lengths sorted descending (pack_padded_sequence default).
    X = jax.random.randint(xkey, (B, T), 0, VOCAB, dtype=jnp.int32)
    X_len = jnp.array([T, 5], dtype=jnp.int32)

    pred = bilstm_forward(X, X_len, fused)      # (B, T, C) emissions
    pred = jax.block_until_ready(pred)

    ref = reference_forward(X, X_len, params)
    assert pred.shape == (B, T, C)
    # Tolerance covers bf16 MXU operands (weights + h); all state math stays f32.
    assert jnp.allclose(pred, ref, atol=2e-2, rtol=2e-2), "mismatch vs JAX reference"

    print("KERNEL_OK")
</pallas_src>

<mosaic_0001>
module attributes {stable_mosaic.version = 11 : i64} {
  func.func @bilstm_classifier_kernel(%arg0: memref<32x1xi32, #tpu.memory_space<vmem>>, %arg1: memref<2x1xi32, #tpu.memory_space<vmem>>, %arg2: memref<40x256xbf16, #tpu.memory_space<vmem>>, %arg3: memref<1x256xf32, #tpu.memory_space<vmem>>, %arg4: memref<64x256xbf16, #tpu.memory_space<vmem>>, %arg5: memref<64x128xbf16, #tpu.memory_space<vmem>>, %arg6: memref<1x128xf32, #tpu.memory_space<vmem>>, %arg7: memref<16x128xf32, #tpu.memory_space<vmem>>, %arg8: memref<16x64xf32, #tpu.memory_space<vmem>>) attributes {dimension_semantics = [], scalar_prefetch = 0 : i64, scratch_operands = 1 : i64, tpu.core_type = #tpu.core_type<tc>} {
    %c0 = arith.constant 0 : index
    %c0_0 = arith.constant 0 : index
    %0 = vector.load %arg0[%c0, %c0_0] : memref<32x1xi32, #tpu.memory_space<vmem>>, vector<32x1xi32>
    %c0_1 = arith.constant 0 : index
    %c0_2 = arith.constant 0 : index
    %1 = vector.load %arg1[%c0_1, %c0_2] : memref<2x1xi32, #tpu.memory_space<vmem>>, vector<2x1xi32>
    %c0_3 = arith.constant 0 : index
    %c0_4 = arith.constant 0 : index
    %2 = vector.load %arg3[%c0_3, %c0_4] : memref<1x256xf32, #tpu.memory_space<vmem>>, vector<1x256xf32>
    %c0_5 = arith.constant 0 : index
    %c0_6 = arith.constant 0 : index
    %3 = vector.load %arg4[%c0_5, %c0_6] : memref<64x256xbf16, #tpu.memory_space<vmem>>, vector<64x256xbf16>
    %4 = tpu.iota {dimensions = array<i32: 1>} : vector<1x256xi32>
    %c64_i32 = arith.constant 64 : i32
    %c0_i32 = arith.constant 0 : i32
    %5 = arith.cmpi eq, %c64_i32, %c0_i32 : i32
    %c1_i32 = arith.constant 1 : i32
    %6 = arith.select %5, %c1_i32, %c64_i32 : i32
    %7 = vector.broadcast %6 : i32 to vector<1x256xi32>
    %8 = arith.remsi %4, %7 : vector<1x256xi32>
    %c0_i32_7 = arith.constant 0 : i32
    %9 = vector.broadcast %c0_i32_7 : i32 to vector<1x256xi32>
    %10 = arith.cmpi ne, %8, %9 : vector<1x256xi32>
    %c0_i32_8 = arith.constant 0 : i32
    %11 = vector.broadcast %c0_i32_8 : i32 to vector<1x256xi32>
    %12 = arith.cmpi slt, %8, %11 : vector<1x256xi32>
    %c0_i32_9 = arith.constant 0 : i32
    %13 = arith.cmpi slt, %6, %c0_i32_9 : i32
    %14 = vector.broadcast %13 : i1 to vector<1x256xi1>
    %15 = vector.broadcast %14 : vector<1x256xi1> to vector<1x256xi1>
    %16 = arith.xori %12, %15 : vector<1x256xi1>
    %17 = arith.andi %16, %10 : vector<1x256xi1>
    %18 = vector.broadcast %6 : i32 to vector<1x256xi32>
    %19 = arith.addi %8, %18 : vector<1x256xi32>
    %20 = arith.select %17, %19, %8 : vector<1x256xi1>, vector<1x256xi32>
    %c32_i32 = arith.constant 32 : i32
    %21 = vector.broadcast %c32_i32 : i32 to vector<1x256xi32>
    %22 = arith.cmpi slt, %20, %21 : vector<1x256xi32>
    %23 = tpu.iota {dimensions = array<i32: 1>} : vector<1x64xi32>
    %c32_i32_10 = arith.constant 32 : i32
    %24 = vector.broadcast %c32_i32_10 : i32 to vector<1x64xi32>
    %25 = arith.cmpi slt, %23, %24 : vector<1x64xi32>
    %26 = tpu.iota {dimensions = array<i32: 1>} : vector<32x40xi32>
    %27 = vector.broadcast %0 : vector<32x1xi32> to vector<32x40xi32>
    %28 = arith.cmpi eq, %26, %27 : vector<32x40xi32>
    %29 = arith.extui %28 : vector<32x40xi1> to vector<32x40xi32>
    %30 = arith.sitofp %29 : vector<32x40xi32> to vector<32x40xf32>
    %31 = arith.truncf %30 : vector<32x40xf32> to vector<32x40xbf16>
    %c0_11 = arith.constant 0 : index
    %c0_12 = arith.constant 0 : index
    %32 = vector.load %arg2[%c0_11, %c0_12] : memref<40x256xbf16, #tpu.memory_space<vmem>>, vector<40x256xbf16>
    %cst = arith.constant dense<0.000000e+00> : vector<32x256xf32>
    %33 = tpu.matmul %31, %32, %cst {dimension_numbers = #tpu.dot_dimension_numbers<[1], [0], [0], [1], [0, 0, 1, 1], [], []>} : vector<32x40xbf16>, vector<40x256xbf16>, vector<32x256xf32> -> vector<32x256xf32>
    %34 = vector.broadcast %2 : vector<1x256xf32> to vector<32x256xf32>
    %35 = arith.addf %33, %34 : vector<32x256xf32>
    %36 = vector.extract_strided_slice %35 {offsets = [0, 0], sizes = [16, 256], strides = [1, 1]} : vector<32x256xf32> to vector<16x256xf32>
    %37 = vector.extract_strided_slice %35 {offsets = [16, 0], sizes = [16, 256], strides = [1, 1]} : vector<32x256xf32> to vector<16x256xf32>
    %38 = vector.shape_cast %22 : vector<1x256xi1> to vector<1x256xi1>
    %39 = vector.broadcast %38 : vector<1x256xi1> to vector<16x256xi1>
    %40 = arith.select %39, %36, %37 : vector<16x256xi1>, vector<16x256xf32>
    %cst_13 = arith.constant 0.000000e+00 : f32
    %41 = vector.broadcast %cst_13 : f32 to vector<2x64xf32>
    %cst_14 = arith.constant 0.000000e+00 : f32
    %42 = vector.broadcast %cst_14 : f32 to vector<2x64xf32>
    %43 = arith.truncf %41 : vector<2x64xf32> to vector<2x64xbf16>
    %cst_15 = arith.constant dense<0.000000e+00> : vector<2x256xf32>
    %44 = tpu.matmul %43, %3, %cst_15 {dimension_numbers = #tpu.dot_dimension_numbers<[1], [0], [0], [1], [0, 0, 1, 1], [], []>} : vector<2x64xbf16>, vector<64x256xbf16>, vector<2x256xf32> -> vector<2x256xf32>
    %45 = vector.extract_strided_slice %40 {offsets = [0, 0], sizes = [2, 256], strides = [1, 1]} : vector<16x256xf32> to vector<2x256xf32>
    %46 = arith.addf %44, %45 : vector<2x256xf32>
    %47 = vector.extract_strided_slice %46 {offsets = [0, 0], sizes = [2, 192], strides = [1, 1]} : vector<2x256xf32> to vector<2x192xf32>
    %48 = arith.negf %47 : vector<2x192xf32>
    %49 = math.exp %48 : vector<2x192xf32>
    %cst_16 = arith.constant 1.000000e+00 : f32
    %50 = vector.broadcast %cst_16 : f32 to vector<2x192xf32>
    %51 = arith.addf %50, %49 : vector<2x192xf32>
    %52 = arith.divf %50, %51 : vector<2x192xf32>
    %53 = vector.extract_strided_slice %52 {offsets = [0, 0], sizes = [2, 64], strides = [1, 1]} : vector<2x192xf32> to vector<2x64xf32>
    %54 = vector.extract_strided_slice %52 {offsets = [0, 64], sizes = [2, 64], strides = [1, 1]} : vector<2x192xf32> to vector<2x64xf32>
    %55 = vector.extract_strided_slice %52 {offsets = [0, 128], sizes = [2, 64], strides = [1, 1]} : vector<2x192xf32> to vector<2x64xf32>
    %56 = vector.extract_strided_slice %46 {offsets = [0, 192], sizes = [2, 64], strides = [1, 1]} : vector<2x256xf32> to vector<2x64xf32>
    %57 = math.tanh %56 : vector<2x64xf32>
    %58 = arith.mulf %54, %42 : vector<2x64xf32>
    %59 = arith.mulf %53, %57 : vector<2x64xf32>
    %60 = arith.addf %58, %59 : vector<2x64xf32>
    %61 = math.tanh %60 : vector<2x64xf32>
    %62 = arith.mulf %55, %61 : vector<2x64xf32>
    %c0_i32_17 = arith.constant 0 : i32
    %c7_i32 = arith.constant 7 : i32
    %63 = vector.broadcast %c0_i32_17 : i32 to vector<1x64xi32>
    %64 = vector.broadcast %c7_i32 : i32 to vector<1x64xi32>
    %65 = arith.select %25, %63, %64 : vector<1x64xi1>, vector<1x64xi32>
    %66 = vector.broadcast %1 : vector<2x1xi32> to vector<2x64xi32>
    %67 = vector.broadcast %65 : vector<1x64xi32> to vector<2x64xi32>
    %68 = arith.cmpi sgt, %66, %67 : vector<2x64xi32>
    %69 = arith.select %68, %62, %41 : vector<2x64xi1>, vector<2x64xf32>
    %70 = arith.select %68, %60, %42 : vector<2x64xi1>, vector<2x64xf32>
    %cst_18 = arith.constant 0.000000e+00 : f32
    %71 = vector.broadcast %cst_18 : f32 to vector<2x64xf32>
    %72 = arith.select %68, %62, %71 : vector<2x64xi1>, vector<2x64xf32>
    %73 = vector.extract_strided_slice %72 {offsets = [0, 0], sizes = [2, 32], strides = [1, 1]} : vector<2x64xf32> to vector<2x32xf32>
    %c0_19 = arith.constant 0 : index
    %c0_20 = arith.constant 0 : index
    %74 = vector.load %arg8[%c0_19, %c0_20] : memref<16x64xf32, #tpu.memory_space<vmem>>, vector<2x32xf32>
    tpu.vector_store %arg8[%c0_19, %c0_20], %73 {strides = array<i32>} : memref<16x64xf32, #tpu.memory_space<vmem>>, vector<2x32xf32>,
    %75 = vector.extract_strided_slice %72 {offsets = [0, 32], sizes = [2, 32], strides = [1, 1]} : vector<2x64xf32> to vector<2x32xf32>
    %c14 = arith.constant 14 : index
    %c32 = arith.constant 32 : index
    %76 = vector.load %arg8[%c14, %c32] : memref<16x64xf32, #tpu.memory_space<vmem>>, vector<2x32xf32>
    tpu.vector_store %arg8[%c14, %c32], %75 {strides = array<i32>} : memref<16x64xf32, #tpu.memory_space<vmem>>, vector<2x32xf32>,
    %77 = arith.truncf %69 : vector<2x64xf32> to vector<2x64xbf16>
    %cst_21 = arith.constant dense<0.000000e+00> : vector<2x256xf32>
    %78 = tpu.matmul %77, %3, %cst_21 {dimension_numbers = #tpu.dot_dimension_numbers<[1], [0], [0], [1], [0, 0, 1, 1], [], []>} : vector<2x64xbf16>, vector<64x256xbf16>, vector<2x256xf32> -> vector<2x256xf32>
    %79 = vector.extract_strided_slice %40 {offsets = [2, 0], sizes = [2, 256], strides = [1, 1]} : vector<16x256xf32> to vector<2x256xf32>
    %80 = arith.addf %78, %79 : vector<2x256xf32>
    %81 = vector.extract_strided_slice %80 {offsets = [0, 0], sizes = [2, 192], strides = [1, 1]} : vector<2x256xf32> to vector<2x192xf32>
    %82 = arith.negf %81 : vector<2x192xf32>
    %83 = math.exp %82 : vector<2x192xf32>
    %cst_22 = arith.constant 1.000000e+00 : f32
    %84 = vector.broadcast %cst_22 : f32 to vector<2x192xf32>
    %85 = arith.addf %84, %83 : vector<2x192xf32>
    %86 = arith.divf %84, %85 : vector<2x192xf32>
    %87 = vector.extract_strided_slice %86 {offsets = [0, 0], sizes = [2, 64], strides = [1, 1]} : vector<2x192xf32> to vector<2x64xf32>
    %88 = vector.extract_strided_slice %86 {offsets = [0, 64], sizes = [2, 64], strides = [1, 1]} : vector<2x192xf32> to vector<2x64xf32>
    %89 = vector.extract_strided_slice %86 {offsets = [0, 128], sizes = [2, 64], strides = [1, 1]} : vector<2x192xf32> to vector<2x64xf32>
    %90 = vector.extract_strided_slice %80 {offsets = [0, 192], sizes = [2, 64], strides = [1, 1]} : vector<2x256xf32> to vector<2x64xf32>
    %91 = math.tanh %90 : vector<2x64xf32>
    %92 = arith.mulf %88, %70 : vector<2x64xf32>
    %93 = arith.mulf %87, %91 : vector<2x64xf32>
    %94 = arith.addf %92, %93 : vector<2x64xf32>
    %95 = math.tanh %94 : vector<2x64xf32>
    %96 = arith.mulf %89, %95 : vector<2x64xf32>
    %c1_i32_23 = arith.constant 1 : i32
    %c6_i32 = arith.constant 6 : i32
    %97 = vector.broadcast %c1_i32_23 : i32 to vector<1x64xi32>
    %98 = vector.broadcast %c6_i32 : i32 to vector<1x64xi32>
    %99 = arith.select %25, %97, %98 : vector<1x64xi1>, vector<1x64xi32>
    %100 = vector.broadcast %1 : vector<2x1xi32> to vector<2x64xi32>
    %101 = vector.broadcast %99 : vector<1x64xi32> to vector<2x64xi32>
    %102 = arith.cmpi sgt, %100, %101 : vector<2x64xi32>
    %103 = arith.select %102, %96, %69 : vector<2x64xi1>, vector<2x64xf32>
    %104 = arith.select %102, %94, %70 : vector<2x64xi1>, vector<2x64xf32>
    %cst_24 = arith.constant 0.000000e+00 : f32
    %105 = vector.broadcast %cst_24 : f32 to vector<2x64xf32>
    %106 = arith.select %102, %96, %105 : vector<2x64xi1>, vector<2x64xf32>
    %107 = vector.extract_strided_slice %106 {offsets = [0, 0], sizes = [2, 32], strides = [1, 1]} : vector<2x64xf32> to vector<2x32xf32>
    %c2 = arith.constant 2 : index
    %c0_25 = arith.constant 0 : index
    %108 = vector.load %arg8[%c2, %c0_25] : memref<16x64xf32, #tpu.memory_space<vmem>>, vector<2x32xf32>
    tpu.vector_store %arg8[%c2, %c0_25], %107 {strides = array<i32>} : memref<16x64xf32, #tpu.memory_space<vmem>>, vector<2x32xf32>,
    %109 = vector.extract_strided_slice %106 {offsets = [0, 32], sizes = [2, 32], strides = [1, 1]} : vector<2x64xf32> to vector<2x32xf32>
    %c12 = arith.constant 12 : index
    %c32_26 = arith.constant 32 : index
    %110 = vector.load %arg8[%c12, %c32_26] : memref<16x64xf32, #tpu.memory_space<vmem>>, vector<2x32xf32>
    tpu.vector_store %arg8[%c12, %c32_26], %109 {strides = array<i32>} : memref<16x64xf32, #tpu.memory_space<vmem>>, vector<2x32xf32>,
    %111 = arith.truncf %103 : vector<2x64xf32> to vector<2x64xbf16>
    %cst_27 = arith.constant dense<0.000000e+00> : vector<2x256xf32>
    %112 = tpu.matmul %111, %3, %cst_27 {dimension_numbers = #tpu.dot_dimension_numbers<[1], [0], [0], [1], [0, 0, 1, 1], [], []>} : vector<2x64xbf16>, vector<64x256xbf16>, vector<2x256xf32> -> vector<2x256xf32>
    %113 = vector.extract_strided_slice %40 {offsets = [4, 0], sizes = [2, 256], strides = [1, 1]} : vector<16x256xf32> to vector<2x256xf32>
    %114 = arith.addf %112, %113 : vector<2x256xf32>
    %115 = vector.extract_strided_slice %114 {offsets = [0, 0], sizes = [2, 192], strides = [1, 1]} : vector<2x256xf32> to vector<2x192xf32>
    %116 = arith.negf %115 : vector<2x192xf32>
    %117 = math.exp %116 : vector<2x192xf32>
    %cst_28 = arith.constant 1.000000e+00 : f32
    %118 = vector.broadcast %cst_28 : f32 to vector<2x192xf32>
    %119 = arith.addf %118, %117 : vector<2x192xf32>
    %120 = arith.divf %118, %119 : vector<2x192xf32>
    %121 = vector.extract_strided_slice %120 {offsets = [0, 0], sizes = [2, 64], strides = [1, 1]} : vector<2x192xf32> to vector<2x64xf32>
    %122 = vector.extract_strided_slice %120 {offsets = [0, 64], sizes = [2, 64], strides = [1, 1]} : vector<2x192xf32> to vector<2x64xf32>
    %123 = vector.extract_strided_slice %120 {offsets = [0, 128], sizes = [2, 64], strides = [1, 1]} : vector<2x192xf32> to vector<2x64xf32>
    %124 = vector.extract_strided_slice %114 {offsets = [0, 192], sizes = [2, 64], strides = [1, 1]} : vector<2x256xf32> to vector<2x64xf32>
    %125 = math.tanh %124 : vector<2x64xf32>
    %126 = arith.mulf %122, %104 : vector<2x64xf32>
    %127 = arith.mulf %121, %125 : vector<2x64xf32>
    %128 = arith.addf %126, %127 : vector<2x64xf32>
    %129 = math.tanh %128 : vector<2x64xf32>
    %130 = arith.mulf %123, %129 : vector<2x64xf32>
    %c2_i32 = arith.constant 2 : i32
    %c5_i32 = arith.constant 5 : i32
    %131 = vector.broadcast %c2_i32 : i32 to vector<1x64xi32>
    %132 = vector.broadcast %c5_i32 : i32 to vector<1x64xi32>
    %133 = arith.select %25, %131, %132 : vector<1x64xi1>, vector<1x64xi32>
    %134 = vector.broadcast %1 : vector<2x1xi32> to vector<2x64xi32>
    %135 = vector.broadcast %133 : vector<1x64xi32> to vector<2x64xi32>
    %136 = arith.cmpi sgt, %134, %135 : vector<2x64xi32>
    %137 = arith.select %136, %130, %103 : vector<2x64xi1>, vector<2x64xf32>
    %138 = arith.select %136, %128, %104 : vector<2x64xi1>, vector<2x64xf32>
    %cst_29 = arith.constant 0.000000e+00 : f32
    %139 = vector.broadcast %cst_29 : f32 to vector<2x64xf32>
    %140 = arith.select %136, %130, %139 : vector<2x64xi1>, vector<2x64xf32>
    %141 = vector.extract_strided_slice %140 {offsets = [0, 0], sizes = [2, 32], strides = [1, 1]} : vector<2x64xf32> to vector<2x32xf32>
    %c4 = arith.constant 4 : index
    %c0_30 = arith.constant 0 : index
    %142 = vector.load %arg8[%c4, %c0_30] : memref<16x64xf32, #tpu.memory_space<vmem>>, vector<2x32xf32>
    tpu.vector_store %arg8[%c4, %c0_30], %141 {strides = array<i32>} : memref<16x64xf32, #tpu.memory_space<vmem>>, vector<2x32xf32>,
    %143 = vector.extract_strided_slice %140 {offsets = [0, 32], sizes = [2, 32], strides = [1, 1]} : vector<2x64xf32> to vector<2x32xf32>
    %c10 = arith.constant 10 : index
    %c32_31 = arith.constant 32 : index
    %144 = vector.load %arg8[%c10, %c32_31] : memref<16x64xf32, #tpu.memory_space<vmem>>, vector<2x32xf32>
    tpu.vector_store %arg8[%c10, %c32_31], %143 {strides = array<i32>} : memref<16x64xf32, #tpu.memory_space<vmem>>, vector<2x32xf32>,
    %145 = arith.truncf %137 : vector<2x64xf32> to vector<2x64xbf16>
    %cst_32 = arith.constant dense<0.000000e+00> : vector<2x256xf32>
    %146 = tpu.matmul %145, %3, %cst_32 {dimension_numbers = #tpu.dot_dimension_numbers<[1], [0], [0], [1], [0, 0, 1, 1], [], []>} : vector<2x64xbf16>, vector<64x256xbf16>, vector<2x256xf32> -> vector<2x256xf32>
    %147 = vector.extract_strided_slice %40 {offsets = [6, 0], sizes = [2, 256], strides = [1, 1]} : vector<16x256xf32> to vector<2x256xf32>
    %148 = arith.addf %146, %147 : vector<2x256xf32>
    %149 = vector.extract_strided_slice %148 {offsets = [0, 0], sizes = [2, 192], strides = [1, 1]} : vector<2x256xf32> to vector<2x192xf32>
    %150 = arith.negf %149 : vector<2x192xf32>
    %151 = math.exp %150 : vector<2x192xf32>
    %cst_33 = arith.constant 1.000000e+00 : f32
    %152 = vector.broadcast %cst_33 : f32 to vector<2x192xf32>
    %153 = arith.addf %152, %151 : vector<2x192xf32>
    %154 = arith.divf %152, %153 : vector<2x192xf32>
    %155 = vector.extract_strided_slice %154 {offsets = [0, 0], sizes = [2, 64], strides = [1, 1]} : vector<2x192xf32> to vector<2x64xf32>
    %156 = vector.extract_strided_slice %154 {offsets = [0, 64], sizes = [2, 64], strides = [1, 1]} : vector<2x192xf32> to vector<2x64xf32>
    %157 = vector.extract_strided_slice %154 {offsets = [0, 128], sizes = [2, 64], strides = [1, 1]} : vector<2x192xf32> to vector<2x64xf32>
    %158 = vector.extract_strided_slice %148 {offsets = [0, 192], sizes = [2, 64], strides = [1, 1]} : vector<2x256xf32> to vector<2x64xf32>
    %159 = math.tanh %158 : vector<2x64xf32>
    %160 = arith.mulf %156, %138 : vector<2x64xf32>
    %161 = arith.mulf %155, %159 : vector<2x64xf32>
    %162 = arith.addf %160, %161 : vector<2x64xf32>
    %163 = math.tanh %162 : vector<2x64xf32>
    %164 = arith.mulf %157, %163 : vector<2x64xf32>
    %c3_i32 = arith.constant 3 : i32
    %c4_i32 = arith.constant 4 : i32
    %165 = vector.broadcast %c3_i32 : i32 to vector<1x64xi32>
    %166 = vector.broadcast %c4_i32 : i32 to vector<1x64xi32>
    %167 = arith.select %25, %165, %166 : vector<1x64xi1>, vector<1x64xi32>
    %168 = vector.broadcast %1 : vector<2x1xi32> to vector<2x64xi32>
    %169 = vector.broadcast %167 : vector<1x64xi32> to vector<2x64xi32>
    %170 = arith.cmpi sgt, %168, %169 : vector<2x64xi32>
    %171 = arith.select %170, %164, %137 : vector<2x64xi1>, vector<2x64xf32>
    %172 = arith.select %170, %162, %138 : vector<2x64xi1>, vector<2x64xf32>
    %cst_34 = arith.constant 0.000000e+00 : f32
    %173 = vector.broadcast %cst_34 : f32 to vector<2x64xf32>
    %174 = arith.select %170, %164, %173 : vector<2x64xi1>, vector<2x64xf32>
    %175 = vector.extract_strided_slice %174 {offsets = [0, 0], sizes = [2, 32], strides = [1, 1]} : vector<2x64xf32> to vector<2x32xf32>
    %c6 = arith.constant 6 : index
    %c0_35 = arith.constant 0 : index
    %176 = vector.load %arg8[%c6, %c0_35] : memref<16x64xf32, #tpu.memory_space<vmem>>, vector<2x32xf32>
    tpu.vector_store %arg8[%c6, %c0_35], %175 {strides = array<i32>} : memref<16x64xf32, #tpu.memory_space<vmem>>, vector<2x32xf32>,
    %177 = vector.extract_strided_slice %174 {offsets = [0, 32], sizes = [2, 32], strides = [1, 1]} : vector<2x64xf32> to vector<2x32xf32>
    %c8 = arith.constant 8 : index
    %c32_36 = arith.constant 32 : index
    %178 = vector.load %arg8[%c8, %c32_36] : memref<16x64xf32, #tpu.memory_space<vmem>>, vector<2x32xf32>
    tpu.vector_store %arg8[%c8, %c32_36], %177 {strides = array<i32>} : memref<16x64xf32, #tpu.memory_space<vmem>>, vector<2x32xf32>,
    %179 = arith.truncf %171 : vector<2x64xf32> to vector<2x64xbf16>
    %cst_37 = arith.constant dense<0.000000e+00> : vector<2x256xf32>
    %180 = tpu.matmul %179, %3, %cst_37 {dimension_numbers = #tpu.dot_dimension_numbers<[1], [0], [0], [1], [0, 0, 1, 1], [], []>} : vector<2x64xbf16>, vector<64x256xbf16>, vector<2x256xf32> -> vector<2x256xf32>
    %181 = vector.extract_strided_slice %40 {offsets = [8, 0], sizes = [2, 256], strides = [1, 1]} : vector<16x256xf32> to vector<2x256xf32>
    %182 = arith.addf %180, %181 : vector<2x256xf32>
    %183 = vector.extract_strided_slice %182 {offsets = [0, 0], sizes = [2, 192], strides = [1, 1]} : vector<2x256xf32> to vector<2x192xf32>
    %184 = arith.negf %183 : vector<2x192xf32>
    %185 = math.exp %184 : vector<2x192xf32>
    %cst_38 = arith.constant 1.000000e+00 : f32
    %186 = vector.broadcast %cst_38 : f32 to vector<2x192xf32>
    %187 = arith.addf %186, %185 : vector<2x192xf32>
    %188 = arith.divf %186, %187 : vector<2x192xf32>
    %189 = vector.extract_strided_slice %188 {offsets = [0, 0], sizes = [2, 64], strides = [1, 1]} : vector<2x192xf32> to vector<2x64xf32>
    %190 = vector.extract_strided_slice %188 {offsets = [0, 64], sizes = [2, 64], strides = [1, 1]} : vector<2x192xf32> to vector<2x64xf32>
    %191 = vector.extract_strided_slice %188 {offsets = [0, 128], sizes = [2, 64], strides = [1, 1]} : vector<2x192xf32> to vector<2x64xf32>
    %192 = vector.extract_strided_slice %182 {offsets = [0, 192], sizes = [2, 64], strides = [1, 1]} : vector<2x256xf32> to vector<2x64xf32>
    %193 = math.tanh %192 : vector<2x64xf32>
    %194 = arith.mulf %190, %172 : vector<2x64xf32>
    %195 = arith.mulf %189, %193 : vector<2x64xf32>
    %196 = arith.addf %194, %195 : vector<2x64xf32>
    %197 = math.tanh %196 : vector<2x64xf32>
    %198 = arith.mulf %191, %197 : vector<2x64xf32>
    %c4_i32_39 = arith.constant 4 : i32
    %c3_i32_40 = arith.constant 3 : i32
    %199 = vector.broadcast %c4_i32_39 : i32 to vector<1x64xi32>
    %200 = vector.broadcast %c3_i32_40 : i32 to vector<1x64xi32>
    %201 = arith.select %25, %199, %200 : vector<1x64xi1>, vector<1x64xi32>
    %202 = vector.broadcast %1 : vector<2x1xi32> to vector<2x64xi32>
    %203 = vector.broadcast %201 : vector<1x64xi32> to vector<2x64xi32>
    %204 = arith.cmpi sgt, %202, %203 : vector<2x64xi32>
    %205 = arith.select %204, %198, %171 : vector<2x64xi1>, vector<2x64xf32>
    %206 = arith.select %204, %196, %172 : vector<2x64xi1>, vector<2x64xf32>
    %cst_41 = arith.constant 0.000000e+00 : f32
    %207 = vector.broadcast %cst_41 : f32 to vector<2x64xf32>
    %208 = arith.select %204, %198, %207 : vector<2x64xi1>, vector<2x64xf32>
    %209 = vector.extract_strided_slice %208 {offsets = [0, 0], sizes = [2, 32], strides = [1, 1]} : vector<2x64xf32> to vector<2x32xf32>
    %c8_42 = arith.constant 8 : index
    %c0_43 = arith.constant 0 : index
    %210 = vector.load %arg8[%c8_42, %c0_43] : memref<16x64xf32, #tpu.memory_space<vmem>>, vector<2x32xf32>
    tpu.vector_store %arg8[%c8_42, %c0_43], %209 {strides = array<i32>} : memref<16x64xf32, #tpu.memory_space<vmem>>, vector<2x32xf32>,
    %211 = vector.extract_strided_slice %208 {offsets = [0, 32], sizes = [2, 32], strides = [1, 1]} : vector<2x64xf32> to vector<2x32xf32>
    %c6_44 = arith.constant 6 : index
    %c32_45 = arith.constant 32 : index
    %212 = vector.load %arg8[%c6_44, %c32_45] : memref<16x64xf32, #tpu.memory_space<vmem>>, vector<2x32xf32>
    tpu.vector_store %arg8[%c6_44, %c32_45], %211 {strides = array<i32>} : memref<16x64xf32, #tpu.memory_space<vmem>>, vector<2x32xf32>,
    %213 = arith.truncf %205 : vector<2x64xf32> to vector<2x64xbf16>
    %cst_46 = arith.constant dense<0.000000e+00> : vector<2x256xf32>
    %214 = tpu.matmul %213, %3, %cst_46 {dimension_numbers = #tpu.dot_dimension_numbers<[1], [0], [0], [1], [0, 0, 1, 1], [], []>} : vector<2x64xbf16>, vector<64x256xbf16>, vector<2x256xf32> -> vector<2x256xf32>
    %215 = vector.extract_strided_slice %40 {offsets = [10, 0], sizes = [2, 256], strides = [1, 1]} : vector<16x256xf32> to vector<2x256xf32>
    %216 = arith.addf %214, %215 : vector<2x256xf32>
    %217 = vector.extract_strided_slice %216 {offsets = [0, 0], sizes = [2, 192], strides = [1, 1]} : vector<2x256xf32> to vector<2x192xf32>
    %218 = arith.negf %217 : vector<2x192xf32>
    %219 = math.exp %218 : vector<2x192xf32>
    %cst_47 = arith.constant 1.000000e+00 : f32
    %220 = vector.broadcast %cst_47 : f32 to vector<2x192xf32>
    %221 = arith.addf %220, %219 : vector<2x192xf32>
    %222 = arith.divf %220, %221 : vector<2x192xf32>
    %223 = vector.extract_strided_slice %222 {offsets = [0, 0], sizes = [2, 64], strides = [1, 1]} : vector<2x192xf32> to vector<2x64xf32>
    %224 = vector.extract_strided_slice %222 {offsets = [0, 64], sizes = [2, 64], strides = [1, 1]} : vector<2x192xf32> to vector<2x64xf32>
    %225 = vector.extract_strided_slice %222 {offsets = [0, 128], sizes = [2, 64], strides = [1, 1]} : vector<2x192xf32> to vector<2x64xf32>
    %226 = vector.extract_strided_slice %216 {offsets = [0, 192], sizes = [2, 64], strides = [1, 1]} : vector<2x256xf32> to vector<2x64xf32>
    %227 = math.tanh %226 : vector<2x64xf32>
    %228 = arith.mulf %224, %206 : vector<2x64xf32>
    %229 = arith.mulf %223, %227 : vector<2x64xf32>
    %230 = arith.addf %228, %229 : vector<2x64xf32>
    %231 = math.tanh %230 : vector<2x64xf32>
    %232 = arith.mulf %225, %231 : vector<2x64xf32>
    %c5_i32_48 = arith.constant 5 : i32
    %c2_i32_49 = arith.constant 2 : i32
    %233 = vector.broadcast %c5_i32_48 : i32 to vector<1x64xi32>
    %234 = vector.broadcast %c2_i32_49 : i32 to vector<1x64xi32>
    %235 = arith.select %25, %233, %234 : vector<1x64xi1>, vector<1x64xi32>
    %236 = vector.broadcast %1 : vector<2x1xi32> to vector<2x64xi32>
    %237 = vector.broadcast %235 : vector<1x64xi32> to vector<2x64xi32>
    %238 = arith.cmpi sgt, %236, %237 : vector<2x64xi32>
    %239 = arith.select %238, %232, %205 : vector<2x64xi1>, vector<2x64xf32>
    %240 = arith.select %238, %230, %206 : vector<2x64xi1>, vector<2x64xf32>
    %cst_50 = arith.constant 0.000000e+00 : f32
    %241 = vector.broadcast %cst_50 : f32 to vector<2x64xf32>
    %242 = arith.select %238, %232, %241 : vector<2x64xi1>, vector<2x64xf32>
    %243 = vector.extract_strided_slice %242 {offsets = [0, 0], sizes = [2, 32], strides = [1, 1]} : vector<2x64xf32> to vector<2x32xf32>
    %c10_51 = arith.constant 10 : index
    %c0_52 = arith.constant 0 : index
    %244 = vector.load %arg8[%c10_51, %c0_52] : memref<16x64xf32, #tpu.memory_space<vmem>>, vector<2x32xf32>
    tpu.vector_store %arg8[%c10_51, %c0_52], %243 {strides = array<i32>} : memref<16x64xf32, #tpu.memory_space<vmem>>, vector<2x32xf32>,
    %245 = vector.extract_strided_slice %242 {offsets = [0, 32], sizes = [2, 32], strides = [1, 1]} : vector<2x64xf32> to vector<2x32xf32>
    %c4_53 = arith.constant 4 : index
    %c32_54 = arith.constant 32 : index
    %246 = vector.load %arg8[%c4_53, %c32_54] : memref<16x64xf32, #tpu.memory_space<vmem>>, vector<2x32xf32>
    tpu.vector_store %arg8[%c4_53, %c32_54], %245 {strides = array<i32>} : memref<16x64xf32, #tpu.memory_space<vmem>>, vector<2x32xf32>,
    %247 = arith.truncf %239 : vector<2x64xf32> to vector<2x64xbf16>
    %cst_55 = arith.constant dense<0.000000e+00> : vector<2x256xf32>
    %248 = tpu.matmul %247, %3, %cst_55 {dimension_numbers = #tpu.dot_dimension_numbers<[1], [0], [0], [1], [0, 0, 1, 1], [], []>} : vector<2x64xbf16>, vector<64x256xbf16>, vector<2x256xf32> -> vector<2x256xf32>
    %249 = vector.extract_strided_slice %40 {offsets = [12, 0], sizes = [2, 256], strides = [1, 1]} : vector<16x256xf32> to vector<2x256xf32>
    %250 = arith.addf %248, %249 : vector<2x256xf32>
    %251 = vector.extract_strided_slice %250 {offsets = [0, 0], sizes = [2, 192], strides = [1, 1]} : vector<2x256xf32> to vector<2x192xf32>
    %252 = arith.negf %251 : vector<2x192xf32>
    %253 = math.exp %252 : vector<2x192xf32>
    %cst_56 = arith.constant 1.000000e+00 : f32
    %254 = vector.broadcast %cst_56 : f32 to vector<2x192xf32>
    %255 = arith.addf %254, %253 : vector<2x192xf32>
    %256 = arith.divf %254, %255 : vector<2x192xf32>
    %257 = vector.extract_strided_slice %256 {offsets = [0, 0], sizes = [2, 64], strides = [1, 1]} : vector<2x192xf32> to vector<2x64xf32>
    %258 = vector.extract_strided_slice %256 {offsets = [0, 64], sizes = [2, 64], strides = [1, 1]} : vector<2x192xf32> to vector<2x64xf32>
    %259 = vector.extract_strided_slice %256 {offsets = [0, 128], sizes = [2, 64], strides = [1, 1]} : vector<2x192xf32> to vector<2x64xf32>
    %260 = vector.extract_strided_slice %250 {offsets = [0, 192], sizes = [2, 64], strides = [1, 1]} : vector<2x256xf32> to vector<2x64xf32>
    %261 = math.tanh %260 : vector<2x64xf32>
    %262 = arith.mulf %258, %240 : vector<2x64xf32>
    %263 = arith.mulf %257, %261 : vector<2x64xf32>
    %264 = arith.addf %262, %263 : vector<2x64xf32>
    %265 = math.tanh %264 : vector<2x64xf32>
    %266 = arith.mulf %259, %265 : vector<2x64xf32>
    %c6_i32_57 = arith.constant 6 : i32
    %c1_i32_58 = arith.constant 1 : i32
    %267 = vector.broadcast %c6_i32_57 : i32 to vector<1x64xi32>
    %268 = vector.broadcast %c1_i32_58 : i32 to vector<1x64xi32>
    %269 = arith.select %25, %267, %268 : vector<1x64xi1>, vector<1x64xi32>
    %270 = vector.broadcast %1 : vector<2x1xi32> to vector<2x64xi32>
    %271 = vector.broadcast %269 : vector<1x64xi32> to vector<2x64xi32>
    %272 = arith.cmpi sgt, %270, %271 : vector<2x64xi32>
    %273 = arith.select %272, %266, %239 : vector<2x64xi1>, vector<2x64xf32>
    %274 = arith.select %272, %264, %240 : vector<2x64xi1>, vector<2x64xf32>
    %cst_59 = arith.constant 0.000000e+00 : f32
    %275 = vector.broadcast %cst_59 : f32 to vector<2x64xf32>
    %276 = arith.select %272, %266, %275 : vector<2x64xi1>, vector<2x64xf32>
    %277 = vector.extract_strided_slice %276 {offsets = [0, 0], sizes = [2, 32], strides = [1, 1]} : vector<2x64xf32> to vector<2x32xf32>
    %c12_60 = arith.constant 12 : index
    %c0_61 = arith.constant 0 : index
    %278 = vector.load %arg8[%c12_60, %c0_61] : memref<16x64xf32, #tpu.memory_space<vmem>>, vector<2x32xf32>
    tpu.vector_store %arg8[%c12_60, %c0_61], %277 {strides = array<i32>} : memref<16x64xf32, #tpu.memory_space<vmem>>, vector<2x32xf32>,
    %279 = vector.extract_strided_slice %276 {offsets = [0, 32], sizes = [2, 32], strides = [1, 1]} : vector<2x64xf32> to vector<2x32xf32>
    %c2_62 = arith.constant 2 : index
    %c32_63 = arith.constant 32 : index
    %280 = vector.load %arg8[%c2_62, %c32_63] : memref<16x64xf32, #tpu.memory_space<vmem>>, vector<2x32xf32>
    tpu.vector_store %arg8[%c2_62, %c32_63], %279 {strides = array<i32>} : memref<16x64xf32, #tpu.memory_space<vmem>>, vector<2x32xf32>,
    %281 = arith.truncf %273 : vector<2x64xf32> to vector<2x64xbf16>
    %cst_64 = arith.constant dense<0.000000e+00> : vector<2x256xf32>
    %282 = tpu.matmul %281, %3, %cst_64 {dimension_numbers = #tpu.dot_dimension_numbers<[1], [0], [0], [1], [0, 0, 1, 1], [], []>} : vector<2x64xbf16>, vector<64x256xbf16>, vector<2x256xf32> -> vector<2x256xf32>
    %283 = vector.extract_strided_slice %40 {offsets = [14, 0], sizes = [2, 256], strides = [1, 1]} : vector<16x256xf32> to vector<2x256xf32>
    %284 = arith.addf %282, %283 : vector<2x256xf32>
    %285 = vector.extract_strided_slice %284 {offsets = [0, 0], sizes = [2, 192], strides = [1, 1]} : vector<2x256xf32> to vector<2x192xf32>
    %286 = arith.negf %285 : vector<2x192xf32>
    %287 = math.exp %286 : vector<2x192xf32>
    %cst_65 = arith.constant 1.000000e+00 : f32
    %288 = vector.broadcast %cst_65 : f32 to vector<2x192xf32>
    %289 = arith.addf %288, %287 : vector<2x192xf32>
    %290 = arith.divf %288, %289 : vector<2x192xf32>
    %291 = vector.extract_strided_slice %290 {offsets = [0, 0], sizes = [2, 64], strides = [1, 1]} : vector<2x192xf32> to vector<2x64xf32>
    %292 = vector.extract_strided_slice %290 {offsets = [0, 64], sizes = [2, 64], strides = [1, 1]} : vector<2x192xf32> to vector<2x64xf32>
    %293 = vector.extract_strided_slice %290 {offsets = [0, 128], sizes = [2, 64], strides = [1, 1]} : vector<2x192xf32> to vector<2x64xf32>
    %294 = vector.extract_strided_slice %284 {offsets = [0, 192], sizes = [2, 64], strides = [1, 1]} : vector<2x256xf32> to vector<2x64xf32>
    %295 = math.tanh %294 : vector<2x64xf32>
    %296 = arith.mulf %292, %274 : vector<2x64xf32>
    %297 = arith.mulf %291, %295 : vector<2x64xf32>
    %298 = arith.addf %296, %297 : vector<2x64xf32>
    %299 = math.tanh %298 : vector<2x64xf32>
    %300 = arith.mulf %293, %299 : vector<2x64xf32>
    %c7_i32_66 = arith.constant 7 : i32
    %c0_i32_67 = arith.constant 0 : i32
    %301 = vector.broadcast %c7_i32_66 : i32 to vector<1x64xi32>
    %302 = vector.broadcast %c0_i32_67 : i32 to vector<1x64xi32>
    %303 = arith.select %25, %301, %302 : vector<1x64xi1>, vector<1x64xi32>
    %304 = vector.broadcast %1 : vector<2x1xi32> to vector<2x64xi32>
    %305 = vector.broadcast %303 : vector<1x64xi32> to vector<2x64xi32>
    %306 = arith.cmpi sgt, %304, %305 : vector<2x64xi32>
    %cst_68 = arith.constant 0.000000e+00 : f32
    %307 = vector.broadcast %cst_68 : f32 to vector<2x64xf32>
    %308 = arith.select %306, %300, %307 : vector<2x64xi1>, vector<2x64xf32>
    %309 = vector.extract_strided_slice %308 {offsets = [0, 0], sizes = [2, 32], strides = [1, 1]} : vector<2x64xf32> to vector<2x32xf32>
    %c14_69 = arith.constant 14 : index
    %c0_70 = arith.constant 0 : index
    %310 = vector.load %arg8[%c14_69, %c0_70] : memref<16x64xf32, #tpu.memory_space<vmem>>, vector<2x32xf32>
    tpu.vector_store %arg8[%c14_69, %c0_70], %309 {strides = array<i32>} : memref<16x64xf32, #tpu.memory_space<vmem>>, vector<2x32xf32>,
    %311 = vector.extract_strided_slice %308 {offsets = [0, 32], sizes = [2, 32], strides = [1, 1]} : vector<2x64xf32> to vector<2x32xf32>
    %c0_71 = arith.constant 0 : index
    %c32_72 = arith.constant 32 : index
    %312 = vector.load %arg8[%c0_71, %c32_72] : memref<16x64xf32, #tpu.memory_space<vmem>>, vector<2x32xf32>
    tpu.vector_store %arg8[%c0_71, %c32_72], %311 {strides = array<i32>} : memref<16x64xf32, #tpu.memory_space<vmem>>, vector<2x32xf32>,
    %c0_73 = arith.constant 0 : index
    %c0_74 = arith.constant 0 : index
    %313 = vector.load %arg8[%c0_73, %c0_74] : memref<16x64xf32, #tpu.memory_space<vmem>>, vector<16x64xf32>
    %314 = arith.truncf %313 : vector<16x64xf32> to vector<16x64xbf16>
    %c0_75 = arith.constant 0 : index
    %c0_76 = arith.constant 0 : index
    %315 = vector.load %arg5[%c0_75, %c0_76] : memref<64x128xbf16, #tpu.memory_space<vmem>>, vector<64x128xbf16>
    %cst_77 = arith.constant dense<0.000000e+00> : vector<16x128xf32>
    %316 = tpu.matmul %314, %315, %cst_77 {dimension_numbers = #tpu.dot_dimension_numbers<[1], [0], [0], [1], [0, 0, 1, 1], [], []>} : vector<16x64xbf16>, vector<64x128xbf16>, vector<16x128xf32> -> vector<16x128xf32>
    %c0_78 = arith.constant 0 : index
    %c0_79 = arith.constant 0 : index
    %317 = vector.load %arg6[%c0_78, %c0_79] : memref<1x128xf32, #tpu.memory_space<vmem>>, vector<1x128xf32>
    %318 = vector.broadcast %317 : vector<1x128xf32> to vector<16x128xf32>
    %319 = arith.addf %316, %318 : vector<16x128xf32>
    %c0_80 = arith.constant 0 : index
    %c0_81 = arith.constant 0 : index
    %320 = vector.load %arg7[%c0_80, %c0_81] : memref<16x128xf32, #tpu.memory_space<vmem>>, vector<16x128xf32>
    tpu.vector_store %arg7[%c0_80, %c0_81], %319 {strides = array<i32>} : memref<16x128xf32, #tpu.memory_space<vmem>>, vector<16x128xf32>,
    return
  }
}

</mosaic_0001>

<bundles_post_ra>
// kernel: tpu_custom_call.1
= control target key start
LH: loop header
LB: loop body
LE: loop exit
PB: predicated region body
PF: predicated region fallthrough
CT: control target
= control target key end

     0   :  { %12 = vsyncpa [#allocation4], 0  ;;  %s1769_s0 = inlined_call_operand.vmem [shape: s32[32,1], index: 0, kind: input, shape index: {}]   ;;  %s1770_s1 = inlined_call_operand.vmem [shape: s32[2,1], index: 1, kind: input, shape index: {}]   ;;  %s1771_s2 = inlined_call_operand.vmem [shape: bf16[40,256], index: 2, kind: input, shape index: {}]   ;;  %s1772_s3 = inlined_call_operand.vmem [shape: f32[1,256], index: 3, kind: input, shape index: {}]   ;;  %s1773_s4 = inlined_call_operand.hbm [shape: bf16[64,256], index: 4, kind: input, shape index: {}]   ;;  %s1774_s5 = inlined_call_operand.hbm [shape: bf16[64,128], index: 5, kind: input, shape index: {}]   ;;  %s1775_s6 = inlined_call_operand.vmem [shape: f32[1,128], index: 6, kind: input, shape index: {}]   ;;  %s1776_s7 = inlined_call_operand.hbm [shape: f32[16,128], index: 7, kind: output, shape index: {}]  }
   0x1   :  { %13 = vsyncpa [#allocation7], 0 }
   0x2   :  { %14 = vsyncpa [#allocation5], 0  ;;  %s1408_s24 = smov [#allocation3]   ;;  %s1336_s28 = scalar_lea.hbm %s1773_s4, 1024 }
   0x3   :  { %s28_s25 = sshll.u32 %s1408_s24, 4  ;;  %p1337_p0 = scmp.ne.s32.totalorder %s1773_s4, %s1336_s28  ;;  %s29_s25 = int_to_ptr.vmem [resolvable:$true] %s28_s25 }
   0x4   :  { %p1340_p1 = scmp.lt.u32.totalorder %s1336_s28, %s1773_s4 }
   0x6   :  { %p1342_p2 = pnand %p1340_p1, %p1337_p0 }
   0x8   :  { %1345 = shalt.err (!%p1342_p2)
}
   0x9   :  { %s1346_s10 = scalar_lea.vmem %s29_s25, 1024  ;;  %p1351_p4 = scmp.lt.s32.totalorder %s29_s25, %s29_s25 }
   0xa   :  { %p1347_p3 = scmp.ne.s32.totalorder %s29_s25, %s1346_s10  ;;  %p1352_p5 = scmp.lt.s32.totalorder %s1346_s10, %s1346_s10 }
   0xc   :  { %p1353_p6 = por %p1352_p5, %p1351_p4 }
   0xe   :  { %p1354_p7 = pnand %p1353_p6, %p1347_p3 }
  0x10   :  { %1357 = shalt.err (!%p1354_p7)
}
  0x11   :  { %s1409_s11 = smov 128   ;;  %s1410_s12 = smov 8  }
  0x12   :  { %34 = dma.hbm_to_vmem [thread:$0]  %s1773_s4, 1024, %s29_s25, [#allocation4], %s1409_s11, %s1409_s11, %s1410_s12  }
  0x13   :  { %s1411_s15 = smov [#allocation6]   ;;  %s1358_s19 = scalar_lea.hbm %s1774_s5, 512 }
  0x14   :  { %s40_s16 = sshll.u32 %s1411_s15, 4  ;;  %p1359_p8 = scmp.ne.s32.totalorder %s1774_s5, %s1358_s19  ;;  %s41_s16 = int_to_ptr.vmem [resolvable:$true] %s40_s16 }
  0x15   :  { %p1362_p9 = scmp.lt.u32.totalorder %s1358_s19, %s1774_s5 }
  0x17   :  { %p1364_p10 = pnand %p1362_p9, %p1359_p8 }
  0x19   :  { %1367 = shalt.err (!%p1364_p10)
}
  0x1a   :  { %s1368_s24 = scalar_lea.vmem %s41_s16, 512  ;;  %p1373_p12 = scmp.lt.s32.totalorder %s41_s16, %s41_s16 }
  0x1b   :  { %p1369_p11 = scmp.ne.s32.totalorder %s41_s16, %s1368_s24  ;;  %p1374_p13 = scmp.lt.s32.totalorder %s1368_s24, %s1368_s24 }
  0x1d   :  { %p1375_p0 = por %p1374_p13, %p1373_p12 }
  0x1f   :  { %p1376_p1 = pnand %p1375_p0, %p1369_p11 }
  0x21   :  { %1379 = shalt.err (!%p1376_p1)
}
  0x22   :  { %s1412_s4 = smov 64   ;;  %s1413_s25 = smov 4  }
  0x23   :  { %46 = dma.hbm_to_vmem [thread:$0]  %s1774_s5, 512, %s41_s16, [#allocation7], %s1412_s4, %s1412_s4, %s1413_s25  }
  0x24   :  { %1402 = dma.done.wait [#allocation4], 1024  }
  0x25   :  { %1403 = vsyncadd [#allocation4], 4294966272 }
  0x26   :  { %1404 = dma.done.wait [#allocation7], 512  }
  0x27   :  { %1405 = vsyncadd [#allocation7], 4294966784  ;;  %v1414_v0 = vmov 0   ;;  %v56_v1 = vld [vmem:[%s1769_s0] sm:$0xff]  ;;  %v58_v2 = vld [vmem:[%s1769_s0 + $0x10] sm:$0xff]  ;;  %vm174_vm0 = vcmask 1043456   ;;  %v70_v21 = vlaneseq }
  0x28   :  { %1214 = vset.pattern.permute.xlu0 %v1414_v0  ;;  %1215 = vset.pattern.permute.xlu1 %v1414_v0  ;;  %v57_v3 = vld [vmem:[%s1769_s0 + $0x8] sm:$0xff]  ;;  %v59_v4 = vld [vmem:[%s1769_s0 + $0x18] sm:$0xff]  ;;  %v130_v10 = vld [vmem:[%s1771_s2 + $0x20] sm:$0xff]  ;;  %v1415_v26 = vmov 0.0   ;;  %vm167_vm3 = vcmask 326656   ;;  %vm368_vm10 = vcmask 254976  }
  0x29   :  { %213 = vmatprep.mubr.bf16.mxu0 %v1414_v0  ;;  %318 = vmatprep.mubr.bf16.mxu1 %v1414_v0  ;;  %v1216_v5 = vld [vmem:[%s1771_s2 + $0x4] ss:$8 sps:$4 sm:$0xff]   ;;  %v1218_v6 = vld [vmem:[%s1771_s2] ss:$8 sps:$4 sm:$0xff]   ;;  %v1219_v7 = vld [vmem:[%s1771_s2 + $0x14] ss:$8 sps:$4 sm:$0xff]   ;;  %v1138_v13 = vcombine.low %v130_v10, %v130_v10  ;;  %v1139_v14 = vcombine.high %v130_v10, %v130_v10 }
  0x2a   :  { %101 = vperm.xlu0 %1214, %v56_v1   ;;  %107 = vperm.xlu1 %1215, %v58_v2   ;;  %v1519_v8 = vld [vmem:[#allocation3 + $0x4] ss:$8 sps:$4 sm:$0xff]   ;;  %v1521_v9 = vld [vmem:[#allocation3] ss:$8 sps:$4 sm:$0xff]   ;;  %v1530_v12 = vld [vmem:[#allocation3 + $0x14] ss:$8 sps:$4 sm:$0xff]  }
  0x2b   :  { %181 = vmatprep.subr.bf16.mxu0 %v1216_v5  ;;  %286 = vmatprep.subr.bf16.mxu1 %v1519_v8  ;;  %v1223_v11 = vld [vmem:[%s1771_s2 + $0x10] ss:$8 sps:$4 sm:$0xff]   ;;  %v1533_v15 = vld [vmem:[#allocation3 + $0x10] ss:$8 sps:$4 sm:$0xff]   ;;  %v1536_v16 = vld [vmem:[#allocation3 + $0x24] ss:$8 sps:$4 sm:$0xff]  }
  0x2c   :  { %182 = vmatpush1.bf16.msra.mxu0 %v1218_v6  ;;  %287 = vmatpush1.bf16.msra.mxu1 %v1521_v9  ;;  %v176_v17 = vsel %vm174_vm0, %v1138_v13, 0  ;;  %v1538_v18 = vld [vmem:[#allocation3 + $0x20] ss:$8 sps:$4 sm:$0xff]   ;;  %v1542_v19 = vld [vmem:[#allocation3 + $0x34] ss:$8 sps:$4 sm:$0xff]   ;;  %v1561_v22 = vand.u32 127, %v70_v21 }
  0x2d   :  { %183 = vmatprep.subr.bf16.mxu0 %v1219_v7  ;;  %288 = vmatprep.subr.bf16.mxu1 %v1530_v12  ;;  %v1545_v20 = vld [vmem:[#allocation3 + $0x30] ss:$8 sps:$4 sm:$0xff]   ;;  %v133_v38 = vshrl.u32 %v70_v21, 7  ;;  %vm370_vm11 = vcmask 517376   ;;  %vm282_vm12 = vcmask 523264   ;;  %s1424_s25 = smov [#allocation8]  }
  0x2e   :  { %104 = vperm.xlu0 %1214, %v57_v3   ;;  %110 = vperm.xlu1 %1215, %v59_v4   ;;  %v61_v40 = vld [vmem:[%s1772_s3] sm:$0x3]  ;;  %v72_v45 = vadd.s32 128, %v1561_v22  ;;  %v77_v51 = vand.u32 63, %v1561_v22  ;;  %vm99_vm8 = vcmp.lt.s32.totalorder %v1561_v22, 32  ;;  %s1117_s26 = sshll.u32 %s1424_s25, 4  ;;  %s1118_s26 = int_to_ptr.vmem [resolvable:$true] %s1117_s26 }
  0x2f   :  { %v134_v39 = vsub.s32 0, %v133_v38  ;;  %v138_v41 = vsub.s32 1, %v133_v38  ;;  %v60_v7 = vld [vmem:[%s1770_s1] sm:$0x3]  ;;  %s1380_s27 = scalar_lea.vmem %s1118_s26, 256  ;;  %p1385_p3 = scmp.lt.s32.totalorder %s1118_s26, %s1118_s26 }
  0x30   :  { %184 = vmatpush1.bf16.msra.mxu0 %v1223_v11  ;;  %289 = vmatpush1.bf16.msra.mxu1 %v1533_v15  ;;  %v84_v52 = vand.u32 63, %v72_v45  ;;  %vm97_vm6 = vcmp.lt.s32.totalorder %v77_v51, 32  ;;  %p1381_p2 = scmp.ne.s32.totalorder %s1118_s26, %s1380_s27  ;;  %p1386_p4 = scmp.lt.s32.totalorder %s1380_s27, %s1380_s27 }
  0x31   :  { %1140 = vmatprep.subr.msk.bf16.mxu0 %vm174_vm0, %v1139_v14  ;;  %290 = vmatprep.subr.bf16.mxu1 %v1536_v16  ;;  %v135_v43 = vrot.slane %v61_v40, %v134_v39  ;;  %v139_v46 = vrot.slane %v61_v40, %v138_v41 }
  0x32   :  { %vm98_vm7 = vcmp.lt.s32.totalorder %v84_v52, 32  ;;  %p1387_p5 = por %p1386_p4, %p1385_p3 }
  0x34   :  { %186 = vmatpush1.bf16.msra.mxu0 %v176_v17  ;;  %291 = vmatpush1.bf16.msra.mxu1 %v1538_v18  ;;  %p1388_p6 = pnand %p1387_p5, %p1381_p2 }
  0x35   :  { %382 = vmatprep.subr.bf16.mxu0 %v1519_v8  ;;  %292 = vmatprep.subr.bf16.mxu1 %v1542_v19 }
  0x38   :  { %293 = vmatpush1.bf16.msra.mxu1 %v1545_v20 }
  0x39   :  { %476 = vmatprep.subr.bf16.mxu1 %v1519_v8 }
  0x3b   :  { %319 = vmatmul.mubr.bf16.vlgmr.msra.gmra.mrb[0].mxu1 %v1414_v0 }
  0x3c   :  { %477 = vmatpush1.bf16.msra.mxu1 %v1521_v9  ;;  %508 = vmatprep.mubr.bf16.mxu1 %v1414_v0 }
  0x3d   :  { %478 = vmatprep.subr.bf16.mxu1 %v1530_v12 }
  0x40   :  { %479 = vmatpush1.bf16.msra.mxu1 %v1533_v15 }
  0x41   :  { %480 = vmatprep.subr.bf16.mxu1 %v1536_v16 }
  0x44   :  { %481 = vmatpush1.bf16.msra.mxu1 %v1538_v18 }
  0x45   :  { %482 = vmatprep.subr.bf16.mxu1 %v1542_v19 }
  0x48   :  { %483 = vmatpush1.bf16.msra.mxu1 %v1545_v20 }
  0x49   :  { %660 = vmatprep.subr.bf16.mxu1 %v1519_v8 }
  0xa9   :  { %v102_v23 = vpop.permute.xlu0 %101  ;;  %v108_v24 = vpop.permute.xlu1 %107 }
  0xaa   :  { %vm112_vm1 = vcmp.eq.s32.totalorder %v1561_v22, %v102_v23  ;;  %vm114_vm4 = vcmp.eq.s32.totalorder %v1561_v22, %v108_v24 }
  0xab   :  { %v1130_v27 = vsel %vm112_vm1, 1.0, %v1415_v26  ;;  %v1132_v31 = vsel %vm114_vm4, 1.0, %v1415_v26 }
  0xad   :  { %v105_v25 = vpop.permute.xlu0 %104  ;;  %v111_v29 = vpop.permute.xlu1 %110 }
  0xae   :  { %vm113_vm2 = vcmp.eq.s32.totalorder %v1561_v22, %v105_v25  ;;  %vm115_vm5 = vcmp.eq.s32.totalorder %v1561_v22, %v111_v29  ;;  %v1174_v22 = vld [vmem:[%s1775_s6] ss:$0 sm:$0xff] }
  0xaf   :  { %v1131_v28 = vsel %vm113_vm2, 1.0, %v1415_v26  ;;  %v1133_v32 = vsel %vm115_vm5, 1.0, %v1415_v26 }
  0xb0   :  { %v124_v30 = vpack.c.bf16 %v1131_v28, %v1130_v27  ;;  %v125_v33 = vpack.c.bf16 %v1133_v32, %v1132_v31  ;;  %v1416_v32 = vmov 7  }
  0xb2   :  { %1141 = vmatmul.mubr.msk.bf16.vlgmr.msra.gmra.mrb[0].mxu0 %vm167_vm3, %v124_v30 }
  0xb3   :  { %223 = vmatprep.mubr.bf16.mxu0 %v1414_v0  ;;  %383 = vmatpush1.bf16.msra.mxu0 %v1521_v9 }
  0xb4   :  { %384 = vmatprep.subr.bf16.mxu0 %v1530_v12 }
  0xb7   :  { %385 = vmatpush1.bf16.msra.mxu0 %v1533_v15 }
  0xb8   :  { %386 = vmatprep.subr.bf16.mxu0 %v1536_v16 }
  0xba   :  { %1142 = vmatmul.mubr.msk.bf16.gmra.mrb[4].mxu0 %vm167_vm3, %v125_v33  ;;  %v357_v33 = vsel %vm99_vm8, 0, %v1416_v32  ;;  %vm1423_vm3 = vmmov 0  }
  0xbb   :  { %387 = vmatpush1.bf16.msra.mxu0 %v1538_v18  ;;  %414 = vmatprep.mubr.bf16.mxu0 %v1414_v0 }
  0xbc   :  { %388 = vmatprep.subr.bf16.mxu0 %v1542_v19 }
  0xbf   :  { %389 = vmatpush1.bf16.msra.mxu0 %v1545_v20 }
  0xc0   :  { %570 = vmatprep.subr.bf16.mxu0 %v1519_v8 }
 0x10e   :  { %v320_v34 = vpop.f32.mrb[0].mxu1 }
 0x10f   :  { %v322_v35 = vpop.f32.mrb[1].mxu1 }
 0x110   :  { %v324_v36 = vpop.f32.mrb[2].mxu1 }
 0x111   :  { %v325_v37 = vpop.f32.mrb[3].mxu1 }
 0x185   :  { %v215_v42 = vpop.f32.mrb[0].mxu0 }
 0x186   :  { %v217_v44 = vpop.f32.mrb[1].mxu0  ;;  %v216_v54 = vadd.f32 %v215_v42, %v135_v43 }
 0x187   :  { %v219_v47 = vpop.f32.mrb[2].mxu0  ;;  %v218_v57 = vadd.f32 %v217_v44, %v139_v46 }
 0x188   :  { %v220_v48 = vadd.f32 %v219_v47, %v135_v43  ;;  %v221_v49 = vpop.f32.mrb[3].mxu0 }
 0x189   :  { %v222_v50 = vadd.f32 %v221_v49, %v139_v46 }
 0x18d   :  { %v225_v53 = vpop.f32.mrb[4].mxu0 }
 0x18e   :  { %v226_v55 = vadd.f32 %v225_v53, %v135_v43  ;;  %v227_v56 = vpop.f32.mrb[5].mxu0 }
 0x18f   :  { %v228_v58 = vadd.f32 %v227_v56, %v139_v46  ;;  %v229_v59 = vpop.f32.mrb[6].mxu0 }
 0x190   :  { %v1586_v60 = vsel %vm97_vm6, %v216_v54, %v226_v55  ;;  %v230_v61 = vadd.f32 %v229_v59, %v135_v43  ;;  %v231_v62 = vpop.f32.mrb[7].mxu0 }
 0x191   :  { %v321_v63 = vadd.f32 %v320_v34, %v1586_v60  ;;  %v1589_v1 = vsel %vm98_vm7, %v218_v57, %v228_v58  ;;  %v232_v2 = vadd.f32 %v231_v62, %v139_v46  ;;  %v375_v41 = vrot.slane %v1586_v60, 2 }
 0x192   :  { %v323_v3 = vadd.f32 %v322_v35, %v1589_v1  ;;  %v1592_v4 = vsel %vm97_vm6, %v220_v48, %v230_v61  ;;  %v376_v43 = vrot.slane %v1589_v1, 2 }
 0x193   :  { %v1594_v5 = vsel %vm98_vm7, %v222_v50, %v232_v2  ;;  %v1151_v10 = vmul.f32 -1.442695, %v321_v63 }
 0x194   :  { %1240 = vtanh.f32 %v323_v3  ;;  %v1152_v28 = vmul.f32 -1.442695, %v323_v3  ;;  %v1417_v3 = vmov 6  }
 0x195   :  { %1242 = vpow2.f32 %v1151_v10 }
 0x19e   :  { %v1241_v6 = vpop.eup %1240 }
 0x19f   :  { %342 = vrot.lane.b32.xlu0 %v1241_v6, %s1412_s4  ;;  %v1243_v11 = vpop.eup %1242  ;;  %v457_v6 = vsel %vm99_vm8, 1, %v1417_v3 }
 0x1a0   :  { %v333_v13 = vadd.f32 1.0, %v1243_v11 }
 0x1a2   :  { %1244 = vrcp.f32 %v333_v13 }
 0x1a3   :  { %359 = vperm.xlu0 %1214, %v60_v7  }
 0x1ac   :  { %v1245_v14 = vpop.eup %1244 }
 0x1ad   :  { %v340_v23 = vmul.f32 0.0, %v1245_v14 }
 0x211   :  { %v343_v17 = vpop.permute.xlu0 %342 }
 0x212   :  { %v345_v21 = vmul.f32 %v1245_v14, %v343_v17 }
 0x214   :  { %347 = vrot.lane.b32.xlu1 %v345_v21, %s1412_s4 }
 0x222   :  { %v1604_v30 = vpop.permute.xlu0 %359 }
 0x223   :  { %vm361_vm9 = vcmp.gt.s32.totalorder %v1604_v30, %v357_v33  ;;  %vm458_vm13 = vcmp.gt.s32.totalorder %v1604_v30, %v457_v6 }
 0x286   :  { %v348_v24 = vpop.permute.xlu1 %347 }
 0x287   :  { %v350_v25 = vadd.f32 %v348_v24, %v340_v23  ;;  %v469_v24 = vrot.slane %v1586_v60, 4 }
 0x289   :  { %1246 = vtanh.f32 %v350_v25  ;;  %364 = vrot.lane.b32.xlu0 %v350_v25, %s1412_s4 }
 0x28a   :  { %1248 = vpow2.f32 %v1152_v28 }
 0x293   :  { %v1247_v27 = vpop.eup %1246 }
 0x294   :  { %353 = vrot.lane.b32.xlu1 %v1247_v27, %s1412_s4  ;;  %v1249_v29 = vpop.eup %1248  ;;  %v470_v27 = vrot.slane %v1589_v1, 4 }
 0x295   :  { %v334_v31 = vadd.f32 1.0, %v1249_v29 }
 0x297   :  { %1250 = vrcp.f32 %v334_v31 }
 0x2a1   :  { %v1251_v36 = vpop.eup %1250 }
 0x2fb   :  { %v365_v34 = vpop.permute.xlu0 %364 }
 0x2fc   :  { %v367_v35 = vsel %vm361_vm9, %v365_v34, 0.0 }
 0x2fd   :  { %437 = vrot.lane.b32.xlu0 %v367_v35, %s1412_s4 }
 0x306   :  { %v354_v37 = vpop.permute.xlu1 %353 }
 0x307   :  { %v356_v38 = vmul.f32 %v1251_v36, %v354_v37 }
 0x309   :  { %v362_v39 = vsel %vm361_vm9, %v356_v38, 0.0 }
 0x30a   :  { %369 = vst.msk [vmem:[#allocation2] sm:$0x3] %vm368_vm10, %v362_v39  ;;  %v372_v40 = vpack.c.bf16 %v362_v39, %v362_v39 }
 0x30b   :  { %371 = vst.msk [vmem:[#allocation2 + $0xe] sm:$0x3] %vm370_vm11, %v362_v39 }
 0x30c   :  { %1153 = vmatmul.mubr.msk.bf16.vlgmr.msra.gmra.mrb[8].mxu0 %vm282_vm12, %v372_v40 }
 0x30d   :  { %571 = vmatpush1.bf16.msra.mxu0 %v1521_v9  ;;  %602 = vmatprep.mubr.bf16.mxu0 %v1414_v0 }
 0x30e   :  { %572 = vmatprep.subr.bf16.mxu0 %v1530_v12 }
 0x311   :  { %573 = vmatpush1.bf16.msra.mxu0 %v1533_v15 }
 0x312   :  { %574 = vmatprep.subr.bf16.mxu0 %v1536_v16 }
 0x315   :  { %575 = vmatpush1.bf16.msra.mxu0 %v1538_v18 }
 0x316   :  { %576 = vmatprep.subr.bf16.mxu0 %v1542_v19 }
 0x319   :  { %577 = vmatpush1.bf16.msra.mxu0 %v1545_v20 }
 0x31a   :  { %756 = vmatprep.subr.bf16.mxu0 %v1519_v8 }
 0x36f   :  { %v438_v56 = vpop.permute.xlu0 %437 }
 0x3df   :  { %v416_v42 = vpop.f32.mrb[8].mxu0 }
 0x3e0   :  { %v417_v44 = vadd.f32 %v416_v42, %v375_v41  ;;  %v418_v45 = vpop.f32.mrb[9].mxu0 }
 0x3e1   :  { %v419_v46 = vadd.f32 %v418_v45, %v376_v43  ;;  %v420_v47 = vpop.f32.mrb[10].mxu0 }
 0x3e2   :  { %v421_v48 = vpop.f32.mrb[11].mxu0  ;;  %v1154_v50 = vmul.f32 -1.442695, %v417_v44 }
 0x3e3   :  { %1252 = vtanh.f32 %v419_v46  ;;  %v1155_v62 = vmul.f32 -1.442695, %v419_v46 }
 0x3e4   :  { %1254 = vpow2.f32 %v1154_v50 }
 0x3ed   :  { %v1253_v49 = vpop.eup %1252 }
 0x3ee   :  { %442 = vrot.lane.b32.xlu1 %v1253_v49, %s1412_s4  ;;  %v1255_v51 = vpop.eup %1254  ;;  %v1418_v49 = vmov 5  }
 0x3ef   :  { %v429_v52 = vadd.f32 1.0, %v1255_v51  ;;  %v551_v50 = vsel %vm99_vm8, 2, %v1418_v49 }
 0x3f0   :  { %vm552_vm14 = vcmp.gt.s32.totalorder %v1604_v30, %v551_v50 }
 0x3f1   :  { %1256 = vrcp.f32 %v429_v52 }
 0x3fb   :  { %v1257_v53 = vpop.eup %1256 }
 0x3fc   :  { %v440_v57 = vmul.f32 %v1257_v53, %v438_v56 }
 0x460   :  { %v443_v54 = vpop.permute.xlu1 %442 }
 0x461   :  { %v445_v55 = vmul.f32 %v1257_v53, %v443_v54 }
 0x463   :  { %447 = vrot.lane.b32.xlu1 %v445_v55, %s1412_s4 }
 0x4d5   :  { %v448_v58 = vpop.permute.xlu1 %447 }
 0x4d6   :  { %v450_v59 = vadd.f32 %v448_v58, %v440_v57 }
 0x4d8   :  { %1258 = vtanh.f32 %v450_v59  ;;  %461 = vrot.lane.b32.xlu1 %v450_v59, %s1412_s4  ;;  %v563_v59 = vrot.slane %v1586_v60, 6 }
 0x4d9   :  { %1260 = vpow2.f32 %v1155_v62  ;;  %v564_v62 = vrot.slane %v1589_v1, 6 }
 0x4e2   :  { %v1259_v61 = vpop.eup %1258 }
 0x4e3   :  { %453 = vrot.lane.b32.xlu0 %v1259_v61, %s1412_s4  ;;  %v1261_v63 = vpop.eup %1260 }
 0x4e4   :  { %v430_v2 = vadd.f32 1.0, %v1261_v63 }
 0x4e6   :  { %1262 = vrcp.f32 %v430_v2 }
 0x4f0   :  { %v1263_v11 = vpop.eup %1262 }
 0x54a   :  { %v462_v7 = vpop.permute.xlu1 %461 }
 0x54b   :  { %v464_v10 = vsel %vm458_vm13, %v462_v7, %v367_v35 }
 0x54c   :  { %531 = vrot.lane.b32.xlu1 %v464_v10, %s1412_s4 }
 0x555   :  { %v454_v13 = vpop.permute.xlu0 %453 }
 0x556   :  { %v456_v14 = vmul.f32 %v1263_v11, %v454_v13 }
 0x558   :  { %v459_v17 = vsel %vm458_vm13, %v456_v14, %v362_v39  ;;  %v465_v21 = vsel %vm458_vm13, %v456_v14, 0.0 }
 0x559   :  { %466 = vst.msk [vmem:[#allocation2 + $0x2] sm:$0x3] %vm368_vm10, %v465_v21  ;;  %v468_v23 = vpack.c.bf16 %v459_v17, %v459_v17 }
 0x55a   :  { %467 = vst.msk [vmem:[#allocation2 + $0xc] sm:$0x3] %vm370_vm11, %v465_v21 }
 0x55b   :  { %1156 = vmatmul.mubr.msk.bf16.vlgmr.msra.gmra.mrb[4].mxu1 %vm282_vm12, %v468_v23 }
 0x55c   :  { %661 = vmatpush1.bf16.msra.mxu1 %v1521_v9  ;;  %692 = vmatprep.mubr.bf16.mxu1 %v1414_v0 }
 0x55d   :  { %662 = vmatprep.subr.bf16.mxu1 %v1530_v12 }
 0x560   :  { %663 = vmatpush1.bf16.msra.mxu1 %v1533_v15 }
 0x561   :  { %664 = vmatprep.subr.bf16.mxu1 %v1536_v16 }
 0x564   :  { %665 = vmatpush1.bf16.msra.mxu1 %v1538_v18 }
 0x565   :  { %666 = vmatprep.subr.bf16.mxu1 %v1542_v19 }
 0x568   :  { %667 = vmatpush1.bf16.msra.mxu1 %v1545_v20 }
 0x569   :  { %850 = vmatprep.subr.bf16.mxu1 %v1519_v8 }
 0x5be   :  { %v532_v41 = vpop.permute.xlu1 %531 }
 0x62e   :  { %v510_v25 = vpop.f32.mrb[4].mxu1 }
 0x62f   :  { %v511_v28 = vadd.f32 %v510_v25, %v469_v24  ;;  %v512_v29 = vpop.f32.mrb[5].mxu1 }
 0x630   :  { %v513_v31 = vadd.f32 %v512_v29, %v470_v27  ;;  %v514_v32 = vpop.f32.mrb[6].mxu1 }
 0x631   :  { %v515_v33 = vpop.f32.mrb[7].mxu1  ;;  %v1157_v35 = vmul.f32 -1.442695, %v511_v28 }
 0x632   :  { %1264 = vtanh.f32 %v513_v31  ;;  %v1158_v46 = vmul.f32 -1.442695, %v513_v31  ;;  %v1419_v31 = vmov 4  }
 0x633   :  { %1266 = vpow2.f32 %v1157_v35  ;;  %v645_v32 = vsel %vm99_vm8, 3, %v1419_v31 }
 0x634   :  { %vm646_vm15 = vcmp.gt.s32.totalorder %v1604_v30, %v645_v32 }
 0x63c   :  { %v1265_v34 = vpop.eup %1264 }
 0x63d   :  { %536 = vrot.lane.b32.xlu0 %v1265_v34, %s1412_s4  ;;  %v1267_v36 = vpop.eup %1266 }
 0x63e   :  { %v523_v37 = vadd.f32 1.0, %v1267_v36 }
 0x640   :  { %1268 = vrcp.f32 %v523_v37 }
 0x64a   :  { %v1269_v38 = vpop.eup %1268 }
 0x64b   :  { %v534_v42 = vmul.f32 %v1269_v38, %v532_v41 }
 0x6af   :  { %v537_v39 = vpop.permute.xlu0 %536 }
 0x6b0   :  { %v539_v40 = vmul.f32 %v1269_v38, %v537_v39 }
 0x6b2   :  { %541 = vrot.lane.b32.xlu0 %v539_v40, %s1412_s4 }
 0x724   :  { %v542_v43 = vpop.permute.xlu0 %541 }
 0x725   :  { %v544_v44 = vadd.f32 %v542_v43, %v534_v42 }
 0x727   :  { %1270 = vtanh.f32 %v544_v44  ;;  %555 = vrot.lane.b32.xlu0 %v544_v44, %s1412_s4 }
 0x728   :  { %1272 = vpow2.f32 %v1158_v46 }
 0x731   :  { %v1271_v45 = vpop.eup %1270 }
 0x732   :  { %547 = vrot.lane.b32.xlu1 %v1271_v45, %s1412_s4  ;;  %v1273_v47 = vpop.eup %1272 }
 0x733   :  { %v524_v48 = vadd.f32 1.0, %v1273_v47 }
 0x735   :  { %1274 = vrcp.f32 %v524_v48 }
 0x73f   :  { %v1275_v53 = vpop.eup %1274 }
 0x799   :  { %v556_v51 = vpop.permute.xlu0 %555 }
 0x79a   :  { %v558_v52 = vsel %vm552_vm14, %v556_v51, %v464_v10 }
 0x79b   :  { %625 = vrot.lane.b32.xlu0 %v558_v52, %s1412_s4 }
 0x7a4   :  { %v548_v54 = vpop.permute.xlu1 %547 }
 0x7a5   :  { %v550_v55 = vmul.f32 %v1275_v53, %v548_v54 }
 0x7a7   :  { %v553_v56 = vsel %vm552_vm14, %v550_v55, %v459_v17  ;;  %v559_v57 = vsel %vm552_vm14, %v550_v55, 0.0 }
 0x7a8   :  { %560 = vst.msk [vmem:[#allocation2 + $0x4] sm:$0x3] %vm368_vm10, %v559_v57  ;;  %v562_v58 = vpack.c.bf16 %v553_v56, %v553_v56 }
 0x7a9   :  { %561 = vst.msk [vmem:[#allocation2 + $0xa] sm:$0x3] %vm370_vm11, %v559_v57 }
 0x7aa   :  { %1159 = vmatmul.mubr.msk.bf16.vlgmr.msra.gmra.mrb[12].mxu0 %vm282_vm12, %v562_v58 }
 0x7ab   :  { %757 = vmatpush1.bf16.msra.mxu0 %v1521_v9  ;;  %788 = vmatprep.mubr.bf16.mxu0 %v1414_v0 }
 0x7ac   :  { %758 = vmatprep.subr.bf16.mxu0 %v1530_v12 }
 0x7af   :  { %759 = vmatpush1.bf16.msra.mxu0 %v1533_v15 }
 0x7b0   :  { %760 = vmatprep.subr.bf16.mxu0 %v1536_v16 }
 0x7b3   :  { %761 = vmatpush1.bf16.msra.mxu0 %v1538_v18 }
 0x7b4   :  { %762 = vmatprep.subr.bf16.mxu0 %v1542_v19 }
 0x7b7   :  { %763 = vmatpush1.bf16.msra.mxu0 %v1545_v20 }
 0x7b8   :  { %944 = vmatprep.subr.bf16.mxu0 %v1519_v8 }
 0x80d   :  { %v626_v1 = vpop.permute.xlu0 %625 }
 0x87d   :  { %v604_v61 = vpop.f32.mrb[12].mxu0 }
 0x87e   :  { %v605_v63 = vadd.f32 %v604_v61, %v563_v59  ;;  %v606_v2 = vpop.f32.mrb[13].mxu0 }
 0x87f   :  { %v607_v3 = vadd.f32 %v606_v2, %v564_v62  ;;  %v608_v6 = vpop.f32.mrb[14].mxu0 }
 0x880   :  { %v609_v7 = vpop.f32.mrb[15].mxu0  ;;  %v1160_v11 = vmul.f32 -1.442695, %v605_v63  ;;  %v1420_v63 = vmov 3  }
 0x881   :  { %1276 = vtanh.f32 %v607_v3  ;;  %v1161_v27 = vmul.f32 -1.442695, %v607_v3  ;;  %v735_v2 = vsel %vm99_vm8, 4, %v1420_v63 }
 0x882   :  { %1278 = vpow2.f32 %v1160_v11  ;;  %vm736_vm0 = vcmp.gt.s32.totalorder %v1604_v30, %v735_v2 }
 0x88b   :  { %v1277_v10 = vpop.eup %1276 }
 0x88c   :  { %630 = vrot.lane.b32.xlu1 %v1277_v10, %s1412_s4  ;;  %v1279_v13 = vpop.eup %1278 }
 0x88d   :  { %v617_v14 = vadd.f32 1.0, %v1279_v13 }
 0x88f   :  { %1280 = vrcp.f32 %v617_v14 }
 0x899   :  { %v1281_v8 = vpop.eup %1280 }
 0x89a   :  { %v628_v21 = vmul.f32 %v1281_v8, %v626_v1 }
 0x8fe   :  { %v631_v17 = vpop.permute.xlu1 %630 }
 0x8ff   :  { %v633_v60 = vmul.f32 %v1281_v8, %v631_v17 }
 0x901   :  { %635 = vrot.lane.b32.xlu1 %v633_v60, %s1412_s4  ;;  %v750_v60 = vrot.slane %v1594_v5, 2 }
 0x973   :  { %v636_v23 = vpop.permute.xlu1 %635 }
 0x974   :  { %v638_v24 = vadd.f32 %v636_v23, %v628_v21 }
 0x976   :  { %1282 = vtanh.f32 %v638_v24  ;;  %649 = vrot.lane.b32.xlu1 %v638_v24, %s1412_s4 }
 0x977   :  { %1284 = vpow2.f32 %v1161_v27 }
 0x980   :  { %v1283_v25 = vpop.eup %1282 }
 0x981   :  { %641 = vrot.lane.b32.xlu0 %v1283_v25, %s1412_s4  ;;  %v1285_v28 = vpop.eup %1284 }
 0x982   :  { %v618_v29 = vadd.f32 1.0, %v1285_v28 }
 0x984   :  { %1286 = vrcp.f32 %v618_v29 }
 0x98e   :  { %v1287_v35 = vpop.eup %1286 }
 0x9e8   :  { %v650_v33 = vpop.permute.xlu1 %649 }
 0x9e9   :  { %v652_v34 = vsel %vm646_vm15, %v650_v33, %v558_v52 }
 0x9ea   :  { %715 = vrot.lane.b32.xlu1 %v652_v34, %s1412_s4 }
 0x9f3   :  { %v642_v36 = vpop.permute.xlu0 %641 }
 0x9f4   :  { %v644_v37 = vmul.f32 %v1287_v35, %v642_v36 }
 0x9f6   :  { %v647_v38 = vsel %vm646_vm15, %v644_v37, %v553_v56  ;;  %v653_v39 = vsel %vm646_vm15, %v644_v37, 0.0  ;;  %v1421_v37 = vmov 2  }
 0x9f7   :  { %654 = vst.msk [vmem:[#allocation2 + $0x6] sm:$0x3] %vm368_vm10, %v653_v39  ;;  %v656_v40 = vpack.c.bf16 %v647_v38, %v647_v38 }
 0x9f8   :  { %655 = vst.msk [vmem:[#allocation2 + $0x8] sm:$0x3] %vm370_vm11, %v653_v39 }
 0x9f9   :  { %1162 = vmatmul.mubr.msk.bf16.vlgmr.msra.gmra.mrb[8].mxu1 %vm282_vm12, %v656_v40 }
 0x9fa   :  { %851 = vmatpush1.bf16.msra.mxu1 %v1521_v9  ;;  %882 = vmatprep.mubr.bf16.mxu1 %v1414_v0 }
 0x9fb   :  { %852 = vmatprep.subr.bf16.mxu1 %v1530_v12 }
 0x9fe   :  { %853 = vmatpush1.bf16.msra.mxu1 %v1533_v15 }
 0x9ff   :  { %854 = vmatprep.subr.bf16.mxu1 %v1536_v16 }
 0xa02   :  { %855 = vmatpush1.bf16.msra.mxu1 %v1538_v18 }
 0xa03   :  { %856 = vmatprep.subr.bf16.mxu1 %v1542_v19 }
 0xa06   :  { %857 = vmatpush1.bf16.msra.mxu1 %v1545_v20 }
 0xa07   :  { %1185 = vmatprep.subr.bf16.mxu1 %v1415_v26 }
 0xa5c   :  { %v716_v54 = vpop.permute.xlu1 %715 }
 0xacc   :  { %v694_v41 = vpop.f32.mrb[8].mxu1 }
 0xacd   :  { %v696_v42 = vpop.f32.mrb[9].mxu1  ;;  %v695_v47 = vadd.f32 %v694_v41, %v1592_v4 }
 0xace   :  { %v697_v43 = vadd.f32 %v696_v42, %v1594_v5  ;;  %v698_v44 = vpop.f32.mrb[10].mxu1 }
 0xacf   :  { %v699_v45 = vpop.f32.mrb[11].mxu1  ;;  %v1163_v48 = vmul.f32 -1.442695, %v695_v47 }
 0xad0   :  { %1288 = vtanh.f32 %v697_v43  ;;  %v1164_v59 = vmul.f32 -1.442695, %v697_v43 }
 0xad1   :  { %1290 = vpow2.f32 %v1163_v48  ;;  %v844_v48 = vrot.slane %v1594_v5, 4 }
 0xada   :  { %v1289_v46 = vpop.eup %1288 }
 0xadb   :  { %720 = vrot.lane.b32.xlu0 %v1289_v46, %s1412_s4  ;;  %v1291_v49 = vpop.eup %1290 }
 0xadc   :  { %v707_v50 = vadd.f32 1.0, %v1291_v49 }
 0xade   :  { %1292 = vrcp.f32 %v707_v50 }
 0xae8   :  { %v1293_v51 = vpop.eup %1292 }
 0xae9   :  { %v718_v55 = vmul.f32 %v1293_v51, %v716_v54  ;;  %v843_v54 = vrot.slane %v1592_v4, 4 }
 0xb4d   :  { %v721_v52 = vpop.permute.xlu0 %720 }
 0xb4e   :  { %v723_v53 = vmul.f32 %v1293_v51, %v721_v52 }
 0xb50   :  { %725 = vrot.lane.b32.xlu0 %v723_v53, %s1412_s4 }
 0xbc2   :  { %v726_v56 = vpop.permute.xlu0 %725 }
 0xbc3   :  { %v728_v57 = vadd.f32 %v726_v56, %v718_v55 }
 0xbc5   :  { %1294 = vtanh.f32 %v728_v57  ;;  %739 = vrot.lane.b32.xlu0 %v728_v57, %s1412_s4 }
 0xbc6   :  { %1296 = vpow2.f32 %v1164_v59 }
 0xbcf   :  { %v1295_v58 = vpop.eup %1294 }
 0xbd0   :  { %731 = vrot.lane.b32.xlu1 %v1295_v58, %s1412_s4  ;;  %v1297_v61 = vpop.eup %1296 }
 0xbd1   :  { %v708_v62 = vadd.f32 1.0, %v1297_v61 }
 0xbd3   :  { %1298 = vrcp.f32 %v708_v62 }
 0xbdd   :  { %v1299_v7 = vpop.eup %1298 }
 0xc37   :  { %v740_v3 = vpop.permute.xlu0 %739 }
 0xc38   :  { %v742_v6 = vsel %vm736_vm0, %v740_v3, %v652_v34 }
 0xc39   :  { %811 = vrot.lane.b32.xlu0 %v742_v6, %s1412_s4 }
 0xc42   :  { %v732_v10 = vpop.permute.xlu1 %731 }
 0xc43   :  { %v734_v11 = vmul.f32 %v1299_v7, %v732_v10 }
 0xc45   :  { %v737_v13 = vsel %vm736_vm0, %v734_v11, %v647_v38  ;;  %v743_v14 = vsel %vm736_vm0, %v734_v11, 0.0  ;;  %v831_v38 = vsel %vm99_vm8, 5, %v1421_v37 }
 0xc46   :  { %744 = vst.msk [vmem:[#allocation2 + $0x8] sm:$0x3] %vm368_vm10, %v743_v14  ;;  %v746_v8 = vpack.c.bf16 %v737_v13, %v737_v13  ;;  %vm832_vm1 = vcmp.gt.s32.totalorder %v1604_v30, %v831_v38 }
 0xc47   :  { %745 = vst.msk [vmem:[#allocation2 + $0x6] sm:$0x3] %vm370_vm11, %v743_v14  ;;  %v1422_v14 = vmov 1  }
 0xc48   :  { %1165 = vmatmul.mubr.msk.bf16.vlgmr.msra.gmra.mrb[16].mxu0 %vm282_vm12, %v746_v8  ;;  %v925_v8 = vsel %vm99_vm8, 6, %v1422_v14 }
 0xc49   :  { %945 = vmatpush1.bf16.msra.mxu0 %v1521_v9  ;;  %976 = vmatprep.mubr.bf16.mxu0 %v1414_v0  ;;  %vm926_vm2 = vcmp.gt.s32.totalorder %v1604_v30, %v925_v8 }
 0xc4a   :  { %946 = vmatprep.subr.bf16.mxu0 %v1530_v12  ;;  %v749_v12 = vrot.slane %v1592_v4, 2 }
 0xc4d   :  { %947 = vmatpush1.bf16.msra.mxu0 %v1533_v15 }
 0xc4e   :  { %948 = vmatprep.subr.bf16.mxu0 %v1536_v16 }
 0xc51   :  { %949 = vmatpush1.bf16.msra.mxu0 %v1538_v18 }
 0xc52   :  { %950 = vmatprep.subr.bf16.mxu0 %v1542_v19 }
 0xc55   :  { %951 = vmatpush1.bf16.msra.mxu0 %v1545_v20 }
 0xcab   :  { %v812_v28 = vpop.permute.xlu0 %811 }
 0xd1b   :  { %v790_v17 = vpop.f32.mrb[16].mxu0 }
 0xd1c   :  { %v792_v1 = vpop.f32.mrb[17].mxu0  ;;  %v791_v15 = vadd.f32 %v790_v17, %v749_v12 }
 0xd1d   :  { %v793_v21 = vadd.f32 %v792_v1, %v750_v60  ;;  %v794_v9 = vpop.f32.mrb[18].mxu0 }
 0xd1e   :  { %v795_v23 = vpop.f32.mrb[19].mxu0  ;;  %v1166_v16 = vmul.f32 -1.442695, %v791_v15 }
 0xd1f   :  { %1300 = vtanh.f32 %v793_v21  ;;  %v1167_v34 = vmul.f32 -1.442695, %v793_v21 }
 0xd20   :  { %1302 = vpow2.f32 %v1166_v16  ;;  %v938_v16 = vrot.slane %v1594_v5, 6  ;;  %v1236_v5 = vld [vmem:[#allocation6] sm:$0xff]  }
 0xd29   :  { %v1301_v24 = vpop.eup %1300 }
 0xd2a   :  { %816 = vrot.lane.b32.xlu1 %v1301_v24, %s1412_s4  ;;  %v1303_v18 = vpop.eup %1302 }
 0xd2b   :  { %v803_v19 = vadd.f32 1.0, %v1303_v18 }
 0xd2d   :  { %1304 = vrcp.f32 %v803_v19 }
 0xd37   :  { %v1305_v20 = vpop.eup %1304 }
 0xd38   :  { %v814_v29 = vmul.f32 %v1305_v20, %v812_v28  ;;  %v937_v28 = vrot.slane %v1592_v4, 6  ;;  %v1237_v4 = vld [vmem:[#allocation6 + $0x8] sm:$0xff]  }
 0xd9c   :  { %v817_v25 = vpop.permute.xlu1 %816 }
 0xd9d   :  { %v819_v27 = vmul.f32 %v1305_v20, %v817_v25 }
 0xd9f   :  { %821 = vrot.lane.b32.xlu1 %v819_v27, %s1412_s4 }
 0xe11   :  { %v822_v31 = vpop.permute.xlu1 %821 }
 0xe12   :  { %v824_v32 = vadd.f32 %v822_v31, %v814_v29 }
 0xe14   :  { %1306 = vtanh.f32 %v824_v32  ;;  %835 = vrot.lane.b32.xlu1 %v824_v32, %s1412_s4 }
 0xe15   :  { %1308 = vpow2.f32 %v1167_v34 }
 0xe1e   :  { %v1307_v33 = vpop.eup %1306 }
 0xe1f   :  { %827 = vrot.lane.b32.xlu0 %v1307_v33, %s1412_s4  ;;  %v1309_v35 = vpop.eup %1308 }
 0xe20   :  { %v804_v36 = vadd.f32 1.0, %v1309_v35 }
 0xe22   :  { %1310 = vrcp.f32 %v804_v36 }
 0xe2c   :  { %v1311_v41 = vpop.eup %1310 }
 0xe86   :  { %v836_v39 = vpop.permute.xlu1 %835 }
 0xe87   :  { %v838_v40 = vsel %vm832_vm1, %v836_v39, %v742_v6 }
 0xe88   :  { %905 = vrot.lane.b32.xlu1 %v838_v40, %s1412_s4 }
 0xe91   :  { %v828_v42 = vpop.permute.xlu0 %827 }
 0xe92   :  { %v830_v43 = vmul.f32 %v1311_v41, %v828_v42  ;;  %v1238_v41 = vld [vmem:[#allocation6 + $0x10] sm:$0xff]   ;;  %v1239_v42 = vld [vmem:[#allocation6 + $0x18] sm:$0xff]  }
 0xe94   :  { %v833_v44 = vsel %vm832_vm1, %v830_v43, %v737_v13  ;;  %v839_v45 = vsel %vm832_vm1, %v830_v43, 0.0 }
 0xe95   :  { %840 = vst.msk [vmem:[#allocation2 + $0xa] sm:$0x3] %vm368_vm10, %v839_v45  ;;  %v842_v46 = vpack.c.bf16 %v833_v44, %v833_v44 }
 0xe96   :  { %841 = vst.msk [vmem:[#allocation2 + $0x4] sm:$0x3] %vm370_vm11, %v839_v45 }
 0xe97   :  { %1168 = vmatmul.mubr.msk.bf16.vlgmr.msra.gmra.mrb[12].mxu1 %vm282_vm12, %v842_v46 }
 0xe98   :  { %1186 = vmatpush3.bf16.msra.mxu1 %v1236_v5  ;;  %1193 = vmatprep.mubr.msk.bf16.mxu1 %vm1423_vm3, %v1415_v26 }
 0xe99   :  { %1187 = vmatprep.subr.bf16.mxu1 %v1415_v26 }
 0xe9c   :  { %1188 = vmatpush3.bf16.msra.mxu1 %v1237_v4 }
 0xe9d   :  { %1189 = vmatprep.subr.bf16.mxu1 %v1415_v26 }
 0xea0   :  { %1190 = vmatpush3.bf16.msra.mxu1 %v1238_v41 }
 0xea1   :  { %1191 = vmatprep.subr.bf16.mxu1 %v1415_v26 }
 0xea4   :  { %1192 = vmatpush3.bf16.msra.mxu1 %v1239_v42 }
 0xefa   :  { %v906_v63 = vpop.permute.xlu1 %905 }
 0xf6a   :  { %v884_v47 = vpop.f32.mrb[12].mxu1 }
 0xf6b   :  { %v886_v49 = vpop.f32.mrb[13].mxu1  ;;  %v885_v55 = vadd.f32 %v884_v47, %v843_v54  ;;  %v1019_v47 = vsel %vm99_vm8, 7, %v1414_v0 }
 0xf6c   :  { %v887_v50 = vadd.f32 %v886_v49, %v844_v48  ;;  %v888_v51 = vpop.f32.mrb[14].mxu1  ;;  %vm1020_vm4 = vcmp.gt.s32.totalorder %v1604_v30, %v1019_v47 }
 0xf6d   :  { %v889_v52 = vpop.f32.mrb[15].mxu1  ;;  %v1169_v56 = vmul.f32 -1.442695, %v885_v55 }
 0xf6e   :  { %1312 = vtanh.f32 %v887_v50  ;;  %v1170_v10 = vmul.f32 -1.442695, %v887_v50 }
 0xf6f   :  { %1314 = vpow2.f32 %v1169_v56 }
 0xf78   :  { %v1313_v53 = vpop.eup %1312 }
 0xf79   :  { %910 = vrot.lane.b32.xlu0 %v1313_v53, %s1412_s4  ;;  %v1315_v57 = vpop.eup %1314 }
 0xf7a   :  { %v897_v58 = vadd.f32 1.0, %v1315_v57 }
 0xf7c   :  { %1316 = vrcp.f32 %v897_v58 }
 0xf86   :  { %v1317_v59 = vpop.eup %1316 }
 0xf87   :  { %v908_v2 = vmul.f32 %v1317_v59, %v906_v63 }
 0xfeb   :  { %v911_v61 = vpop.permute.xlu0 %910 }
 0xfec   :  { %v913_v62 = vmul.f32 %v1317_v59, %v911_v61 }
 0xfee   :  { %915 = vrot.lane.b32.xlu0 %v913_v62, %s1412_s4 }
0x1060   :  { %v916_v3 = vpop.permute.xlu0 %915 }
0x1061   :  { %v918_v6 = vadd.f32 %v916_v3, %v908_v2 }
0x1063   :  { %1318 = vtanh.f32 %v918_v6  ;;  %929 = vrot.lane.b32.xlu0 %v918_v6, %s1412_s4 }
0x1064   :  { %1320 = vpow2.f32 %v1170_v10 }
0x106d   :  { %v1319_v7 = vpop.eup %1318 }
0x106e   :  { %921 = vrot.lane.b32.xlu1 %v1319_v7, %s1412_s4  ;;  %v1321_v11 = vpop.eup %1320 }
0x106f   :  { %v898_v13 = vadd.f32 1.0, %v1321_v11 }
0x1071   :  { %1322 = vrcp.f32 %v898_v13 }
0x107b   :  { %v1323_v1 = vpop.eup %1322 }
0x10d5   :  { %v930_v17 = vpop.permute.xlu0 %929 }
0x10d6   :  { %v932_v60 = vsel %vm926_vm2, %v930_v17, %v838_v40 }
0x10d7   :  { %999 = vrot.lane.b32.xlu0 %v932_v60, %s1412_s4 }
0x10e0   :  { %v922_v21 = vpop.permute.xlu1 %921 }
0x10e1   :  { %v924_v9 = vmul.f32 %v1323_v1, %v922_v21 }
0x10e3   :  { %v927_v23 = vsel %vm926_vm2, %v924_v9, %v833_v44  ;;  %v933_v24 = vsel %vm926_vm2, %v924_v9, 0.0 }
0x10e4   :  { %934 = vst.msk [vmem:[#allocation2 + $0xc] sm:$0x3] %vm368_vm10, %v933_v24  ;;  %v936_v12 = vpack.c.bf16 %v927_v23, %v927_v23 }
0x10e5   :  { %935 = vst.msk [vmem:[#allocation2 + $0x2] sm:$0x3] %vm370_vm11, %v933_v24 }
0x10e6   :  { %1171 = vmatmul.mubr.msk.bf16.vlgmr.msra.gmra.mrb[20].mxu0 %vm282_vm12, %v936_v12 }
0x1149   :  { %v1000_v37 = vpop.permute.xlu0 %999 }
0x11b9   :  { %v978_v15 = vpop.f32.mrb[20].mxu0 }
0x11ba   :  { %v980_v18 = vpop.f32.mrb[21].mxu0  ;;  %v979_v29 = vadd.f32 %v978_v15, %v937_v28 }
0x11bb   :  { %v981_v19 = vadd.f32 %v980_v18, %v938_v16  ;;  %v982_v20 = vpop.f32.mrb[22].mxu0 }
0x11bc   :  { %v983_v25 = vpop.f32.mrb[23].mxu0  ;;  %v1172_v31 = vmul.f32 -1.442695, %v979_v29 }
0x11bd   :  { %1324 = vtanh.f32 %v981_v19  ;;  %v1173_v44 = vmul.f32 -1.442695, %v981_v19 }
0x11be   :  { %1326 = vpow2.f32 %v1172_v31 }
0x11c7   :  { %v1325_v27 = vpop.eup %1324 }
0x11c8   :  { %1004 = vrot.lane.b32.xlu1 %v1325_v27, %s1412_s4  ;;  %v1327_v32 = vpop.eup %1326 }
0x11c9   :  { %v991_v33 = vadd.f32 1.0, %v1327_v32 }
0x11cb   :  { %1328 = vrcp.f32 %v991_v33 }
0x11d5   :  { %v1329_v34 = vpop.eup %1328 }
0x11d6   :  { %v1002_v38 = vmul.f32 %v1329_v34, %v1000_v37 }
0x123a   :  { %v1005_v35 = vpop.permute.xlu1 %1004 }
0x123b   :  { %v1007_v36 = vmul.f32 %v1329_v34, %v1005_v35 }
0x123d   :  { %1009 = vrot.lane.b32.xlu1 %v1007_v36, %s1412_s4 }
0x12af   :  { %v1010_v39 = vpop.permute.xlu1 %1009 }
0x12b0   :  { %v1012_v40 = vadd.f32 %v1010_v39, %v1002_v38 }
0x12b2   :  { %1330 = vtanh.f32 %v1012_v40 }
0x12b3   :  { %1332 = vpow2.f32 %v1173_v44 }
0x12bc   :  { %v1331_v43 = vpop.eup %1330 }
0x12bd   :  { %1015 = vrot.lane.b32.xlu0 %v1331_v43, %s1412_s4  ;;  %v1333_v45 = vpop.eup %1332 }
0x12be   :  { %v992_v46 = vadd.f32 1.0, %v1333_v45 }
0x12c0   :  { %1334 = vrcp.f32 %v992_v46 }
0x12ca   :  { %v1335_v48 = vpop.eup %1334 }
0x132f   :  { %v1016_v49 = vpop.permute.xlu0 %1015 }
0x1330   :  { %v1018_v50 = vmul.f32 %v1335_v48, %v1016_v49 }
0x1332   :  { %v1021_v51 = vsel %vm1020_vm4, %v1018_v50, 0.0 }
0x1333   :  { %1022 = vst.msk [vmem:[#allocation2 + $0xe] sm:$0x3] %vm368_vm10, %v1021_v51 }
0x1334   :  { %1023 = vst.msk [vmem:[#allocation2] sm:$0x3] %vm370_vm11, %v1021_v51 }
0x133a   :  { %v1025_v52 = vld [vmem:[#allocation2 + $0x8] sm:$0xff] }
0x133b   :  { %v1024_v26 = vld [vmem:[#allocation2] sm:$0xff] }
0x133c   :  { %v1026_v53 = vpack.c.bf16 %v1025_v52, %v1024_v26 }
0x133e   :  { %1194 = vmatmul.mubr.msk.bf16.vlgmr.msra.gmra.mrb[16].mxu1 %vm282_vm12, %v1026_v53 }
0x1411   :  { %v1103_v0 = vpop.f32.mrb[16].mxu1 }
0x1412   :  { %v1104_v54 = vadd.f32 %v1174_v22, %v1103_v0  ;;  %v1195_v55 = vpop.f32.mrb[17].mxu1 }
0x1413   :  { %v1106_v30 = vpop.f32.mrb[18].mxu1 }
0x1414   :  { %1110 = vst [vmem:[#allocation8] sm:$0xff] %v1104_v54  ;;  %v1107_v56 = vadd.f32 %v1174_v22, %v1106_v30  ;;  %v1196_v57 = vpop.f32.mrb[19].mxu1 }
0x1416   :  { %1111 = vst [vmem:[#allocation8 + $0x8] sm:$0xff] %v1107_v56 }
0x1417   :  { %1391 = shalt.err (!%p1388_p6)
}
0x1418   :  { %s1392_s29 = scalar_lea.hbm %s1776_s7, 256 }
0x1419   :  { %p1393_p7 = scmp.ne.s32.totalorder %s1776_s7, %s1392_s29  ;;  %p1396_p8 = scmp.lt.u32.totalorder %s1392_s29, %s1776_s7 }
0x141b   :  { %p1398_p9 = pnand %p1396_p8, %p1393_p7 }
0x141d   :  { %1401 = shalt.err (!%p1398_p9)
}
0x141e   :  { %1123 = dma.vmem_to_hbm [thread:$0]  %s1118_s26, 256, %s1776_s7, [#allocation5], %s1409_s11, %s1409_s11, %s1410_s12  }
0x141f   :  { %1406 = dma.done.wait [#allocation5], 256  }
0x1420   :  { %1407 = vsyncadd [#allocation5], 4294967040 }
0x1421   :  { %1127 = vsyncpa [#allocation4], 1 }
0x1422   :  { %1128 = vsyncpa [#allocation7], 1 }
0x1423   :  { %1129 = vsyncpa [#allocation5], 1 }

</bundles_post_ra>
